<compile_context>
chip_gen: v5e
topology: v5e:2x2
jax: 0.10.0
libtpu: 0.0.40
codegen_flags: <defaults>
</compile_context>

<pallas_src>
import jax
import jax.numpy as jnp
from jax.experimental import pallas as pl
from jax.experimental.pallas import tpu as pltpu


# ------------------------------------------------------------------ kernel --
def _mlp_kernel(x_ref, z_ref,
                w1x_ref, w1z_ref, b1_ref,
                w2_ref, b2_ref, w3_ref, b3_ref,
                out_ref):
    x = x_ref[...]                                          # (bn, 64)
    # fc1 split: x @ W1[:64] + z @ W1[64:]  (z = concat of the 3 embeddings)
    h1 = jnp.dot(x, w1x_ref[...], preferred_element_type=jnp.float32)
    h1 = h1 + jnp.dot(z_ref[...], w1z_ref[...],
                      preferred_element_type=jnp.float32)
    h1 = jnp.maximum(h1 + b1_ref[...], 0.0)                 # relu(fc1)
    h2 = jnp.dot(h1, w2_ref[...], preferred_element_type=jnp.float32)
    h2 = jnp.maximum(h2 + b2_ref[...], 0.0)                 # relu(fc2)
    y = jnp.dot(h2, w3_ref[...], preferred_element_type=jnp.float32)
    out_ref[...] = y + b3_ref[...] + x                      # fc3 + residual


# ----------------------------------------------------------------- wrapper --
def key_network_forward(x, p, b, h, params, *, block_n=512):
    """x: (N, 64) f32; p, b, h: (N,) int32 index tensors."""
    N = x.shape[0]

    # Tiny embedding gathers (176 B/row) -- cheap glue, fused by XLA into one
    # pass.  The 108-wide concat with x is NOT materialized.
    z = jnp.concatenate(
        [params["emb_pos"][p], params["emb_blocks"][b], params["emb_heads"][h]],
        axis=1)                                             # (N, 44)
    d_z = z.shape[1]

    w1 = params["w1"]                                       # (108, 128)
    w1x, w1z = w1[:64, :], w1[64:, :]                       # (64,128), (44,128)
    b1, w2, b2 = params["b1"], params["w2"], params["b2"]
    w3, b3 = params["w3"], params["b3"]

    # Pad rows up to a multiple of the tile size; padded rows are sliced off.
    n_pad = pl.cdiv(N, block_n) * block_n
    if n_pad != N:
        pad = ((0, n_pad - N), (0, 0))
        x_p = jnp.pad(x, pad)
        z_p = jnp.pad(z, pad)
    else:
        x_p, z_p = x, z

    grid = (n_pad // block_n,)
    out = pl.pallas_call(
        _mlp_kernel,
        out_shape=jax.ShapeDtypeStruct((n_pad, 64), jnp.float32),
        grid_spec=pltpu.PrefetchScalarGridSpec(
            num_scalar_prefetch=0,
            grid=grid,
            in_specs=[
                pl.BlockSpec((block_n, 64), lambda i: (i, 0)),    # x rows
                pl.BlockSpec((block_n, d_z), lambda i: (i, 0)),   # z rows
                pl.BlockSpec((64, 128), lambda i: (0, 0)),        # W1[:64]
                pl.BlockSpec((d_z, 128), lambda i: (0, 0)),       # W1[64:]
                pl.BlockSpec((1, 128), lambda i: (0, 0)),         # b1
                pl.BlockSpec((128, 128), lambda i: (0, 0)),       # W2
                pl.BlockSpec((1, 128), lambda i: (0, 0)),         # b2
                pl.BlockSpec((128, 64), lambda i: (0, 0)),        # W3
                pl.BlockSpec((1, 64), lambda i: (0, 0)),          # b3
            ],
            out_specs=pl.BlockSpec((block_n, 64), lambda i: (i, 0)),
        ),
        compiler_params=pltpu.CompilerParams(
            dimension_semantics=("parallel",),
            vmem_limit_bytes=32 * 1024 * 1024),
    )(x_p, z_p, w1x, w1z, b1, w2, b2, w3, b3)
    return out[:N]


# ------------------------------------------------------------- param init ---
def init_params(key,
                num_pos=256, num_blocks=30, num_heads=3,
                emb_pos_dim=32, emb_blocks_dim=4, emb_heads_dim=8):
    d_in = 64 + emb_pos_dim + emb_blocks_dim + emb_heads_dim  # 108
    ks = jax.random.split(key, 9)

    def lin(kw, kb, fan_in, fan_out):
        bound = 1.0 / jnp.sqrt(fan_in)
        w = jax.random.uniform(kw, (fan_in, fan_out), jnp.float32, -bound, bound)
        b = jax.random.uniform(kb, (1, fan_out), jnp.float32, -bound, bound)
        return w, b

    params = {
        "emb_pos":    jax.random.normal(ks[0], (num_pos,    emb_pos_dim),    jnp.float32),
        "emb_blocks": jax.random.normal(ks[1], (num_blocks, emb_blocks_dim), jnp.float32),
        "emb_heads":  jax.random.normal(ks[2], (num_heads,  emb_heads_dim),  jnp.float32),
    }
    params["w1"], params["b1"] = lin(ks[3], ks[4], d_in, 128)
    params["w2"], params["b2"] = lin(ks[5], ks[6], 128, 128)
    params["w3"], params["b3"] = lin(ks[7], ks[8], 128, 64)
    return params


def reference_forward(x, p, b, h, params):
    xz = jnp.concatenate(
        [x, params["emb_pos"][p], params["emb_blocks"][b], params["emb_heads"][h]],
        axis=1)
    xz = jax.nn.relu(xz @ params["w1"] + params["b1"])
    xz = jax.nn.relu(xz @ params["w2"] + params["b2"])
    return xz @ params["w3"] + params["b3"] + x


# ----------------------------------------------------------------- main -----
if __name__ == "__main__":
    key = jax.random.PRNGKey(0)
    k_params, kx, kp, kb, kh = jax.random.split(key, 5)

    params = init_params(k_params)

    # N is not a multiple of the 512-row tile -> exercises the padding path,
    # and the padded grid (4 steps) exercises pipelining / both v7x cores.
    N = 2000
    x = jax.random.normal(kx, (N, 64), jnp.float32)
    p = jax.random.randint(kp, (N,), 0, 256, jnp.int32)
    b = jax.random.randint(kb, (N,), 0, 30, jnp.int32)
    h = jax.random.randint(kh, (N,), 0, 3, jnp.int32)

    fwd = jax.jit(key_network_forward)
    out = jax.block_until_ready(fwd(x, p, b, h, params))

    ref = reference_forward(x, p, b, h, params)
    assert out.shape == (N, 64)
    err = float(jnp.max(jnp.abs(out - ref)))
    assert jnp.allclose(out, ref, atol=1e-4, rtol=1e-4), err

    print("KERNEL_OK")
</pallas_src>

<mosaic_0001>
module attributes {stable_mosaic.version = 11 : i64} {
  func.func @_mlp_kernel(%arg0: i32, %arg1: memref<512x64xf32, #tpu.memory_space<vmem>>, %arg2: memref<512x44xf32, #tpu.memory_space<vmem>>, %arg3: memref<64x128xf32, #tpu.memory_space<vmem>>, %arg4: memref<44x128xf32, #tpu.memory_space<vmem>>, %arg5: memref<1x128xf32, #tpu.memory_space<vmem>>, %arg6: memref<128x128xf32, #tpu.memory_space<vmem>>, %arg7: memref<1x128xf32, #tpu.memory_space<vmem>>, %arg8: memref<128x64xf32, #tpu.memory_space<vmem>>, %arg9: memref<1x64xf32, #tpu.memory_space<vmem>>, %arg10: memref<512x64xf32, #tpu.memory_space<vmem>>) attributes {dimension_semantics = [#tpu.dimension_semantics<parallel>], iteration_bounds = array<i64: 4>, scalar_prefetch = 0 : i64, scratch_operands = 0 : i64, tpu.core_type = #tpu.core_type<tc>, window_params = [{transform_indices = @transform_0, window_bounds = array<i64: 512, 64>}, {transform_indices = @transform_1, window_bounds = array<i64: 512, 44>}, {pipeline_mode = #tpu.pipeline_mode<synchronous>, transform_indices = @transform_2, window_bounds = array<i64: 64, 128>}, {pipeline_mode = #tpu.pipeline_mode<synchronous>, transform_indices = @transform_3, window_bounds = array<i64: 44, 128>}, {pipeline_mode = #tpu.pipeline_mode<synchronous>, transform_indices = @transform_4, window_bounds = array<i64: 1, 128>}, {pipeline_mode = #tpu.pipeline_mode<synchronous>, transform_indices = @transform_5, window_bounds = array<i64: 128, 128>}, {pipeline_mode = #tpu.pipeline_mode<synchronous>, transform_indices = @transform_6, window_bounds = array<i64: 1, 128>}, {pipeline_mode = #tpu.pipeline_mode<synchronous>, transform_indices = @transform_7, window_bounds = array<i64: 128, 64>}, {pipeline_mode = #tpu.pipeline_mode<synchronous>, transform_indices = @transform_8, window_bounds = array<i64: 1, 64>}, {transform_indices = @transform_9, window_bounds = array<i64: 512, 64>}]} {
    %c0 = arith.constant 0 : index
    %c0_0 = arith.constant 0 : index
    %0 = vector.load %arg1[%c0, %c0_0] : memref<512x64xf32, #tpu.memory_space<vmem>>, vector<512x64xf32>
    %c0_1 = arith.constant 0 : index
    %c0_2 = arith.constant 0 : index
    %1 = vector.load %arg3[%c0_1, %c0_2] : memref<64x128xf32, #tpu.memory_space<vmem>>, vector<64x128xf32>
    %cst = arith.constant dense<0.000000e+00> : vector<512x128xf32>
    %2 = tpu.matmul %0, %1, %cst {dimension_numbers = #tpu.dot_dimension_numbers<[1], [0], [0], [1], [0, 0, 1, 1], [], []>} : vector<512x64xf32>, vector<64x128xf32>, vector<512x128xf32> -> vector<512x128xf32>
    %c0_3 = arith.constant 0 : index
    %c0_4 = arith.constant 0 : index
    %3 = vector.load %arg2[%c0_3, %c0_4] : memref<512x44xf32, #tpu.memory_space<vmem>>, vector<512x44xf32>
    %c0_5 = arith.constant 0 : index
    %c0_6 = arith.constant 0 : index
    %4 = vector.load %arg4[%c0_5, %c0_6] : memref<44x128xf32, #tpu.memory_space<vmem>>, vector<44x128xf32>
    %cst_7 = arith.constant dense<0.000000e+00> : vector<512x128xf32>
    %5 = tpu.matmul %3, %4, %cst_7 {dimension_numbers = #tpu.dot_dimension_numbers<[1], [0], [0], [1], [0, 0, 1, 1], [], []>} : vector<512x44xf32>, vector<44x128xf32>, vector<512x128xf32> -> vector<512x128xf32>
    %6 = arith.addf %2, %5 : vector<512x128xf32>
    %c0_8 = arith.constant 0 : index
    %c0_9 = arith.constant 0 : index
    %7 = vector.load %arg5[%c0_8, %c0_9] : memref<1x128xf32, #tpu.memory_space<vmem>>, vector<1x128xf32>
    %8 = vector.broadcast %7 : vector<1x128xf32> to vector<512x128xf32>
    %9 = arith.addf %6, %8 : vector<512x128xf32>
    %cst_10 = arith.constant 0.000000e+00 : f32
    %10 = vector.broadcast %cst_10 : f32 to vector<512x128xf32>
    %11 = arith.maximumf %9, %10 : vector<512x128xf32>
    %c0_11 = arith.constant 0 : index
    %c0_12 = arith.constant 0 : index
    %12 = vector.load %arg6[%c0_11, %c0_12] : memref<128x128xf32, #tpu.memory_space<vmem>>, vector<128x128xf32>
    %cst_13 = arith.constant dense<0.000000e+00> : vector<512x128xf32>
    %13 = tpu.matmul %11, %12, %cst_13 {dimension_numbers = #tpu.dot_dimension_numbers<[1], [0], [0], [1], [0, 0, 1, 1], [], []>} : vector<512x128xf32>, vector<128x128xf32>, vector<512x128xf32> -> vector<512x128xf32>
    %c0_14 = arith.constant 0 : index
    %c0_15 = arith.constant 0 : index
    %14 = vector.load %arg7[%c0_14, %c0_15] : memref<1x128xf32, #tpu.memory_space<vmem>>, vector<1x128xf32>
    %15 = vector.broadcast %14 : vector<1x128xf32> to vector<512x128xf32>
    %16 = arith.addf %13, %15 : vector<512x128xf32>
    %cst_16 = arith.constant 0.000000e+00 : f32
    %17 = vector.broadcast %cst_16 : f32 to vector<512x128xf32>
    %18 = arith.maximumf %16, %17 : vector<512x128xf32>
    %c0_17 = arith.constant 0 : index
    %c0_18 = arith.constant 0 : index
    %19 = vector.load %arg8[%c0_17, %c0_18] : memref<128x64xf32, #tpu.memory_space<vmem>>, vector<128x64xf32>
    %cst_19 = arith.constant dense<0.000000e+00> : vector<512x64xf32>
    %20 = tpu.matmul %18, %19, %cst_19 {dimension_numbers = #tpu.dot_dimension_numbers<[1], [0], [0], [1], [0, 0, 1, 1], [], []>} : vector<512x128xf32>, vector<128x64xf32>, vector<512x64xf32> -> vector<512x64xf32>
    %c0_20 = arith.constant 0 : index
    %c0_21 = arith.constant 0 : index
    %21 = vector.load %arg9[%c0_20, %c0_21] : memref<1x64xf32, #tpu.memory_space<vmem>>, vector<1x64xf32>
    %22 = vector.broadcast %21 : vector<1x64xf32> to vector<512x64xf32>
    %23 = arith.addf %20, %22 : vector<512x64xf32>
    %24 = arith.addf %23, %0 : vector<512x64xf32>
    %c0_22 = arith.constant 0 : index
    %c0_23 = arith.constant 0 : index
    %25 = vector.load %arg10[%c0_22, %c0_23] : memref<512x64xf32, #tpu.memory_space<vmem>>, vector<512x64xf32>
    tpu.vector_store %arg10[%c0_22, %c0_23], %24 {strides = array<i32>} : memref<512x64xf32, #tpu.memory_space<vmem>>, vector<512x64xf32>,
    return
  }
  func.func @transform_0(%arg0: i32) -> (i32, i32) {
    %c0_i32 = arith.constant 0 : i32
    %c0_i32_0 = arith.constant 0 : i32
    return %arg0, %c0_i32 : i32, i32
  }
  func.func @transform_1(%arg0: i32) -> (i32, i32) {
    %c0_i32 = arith.constant 0 : i32
    %c0_i32_0 = arith.constant 0 : i32
    return %arg0, %c0_i32 : i32, i32
  }
  func.func @transform_2(%arg0: i32) -> (i32, i32) {
    %c0_i32 = arith.constant 0 : i32
    %c0_i32_0 = arith.constant 0 : i32
    %c0_i32_1 = arith.constant 0 : i32
    return %c0_i32, %c0_i32_0 : i32, i32
  }
  func.func @transform_3(%arg0: i32) -> (i32, i32) {
    %c0_i32 = arith.constant 0 : i32
    %c0_i32_0 = arith.constant 0 : i32
    %c0_i32_1 = arith.constant 0 : i32
    return %c0_i32, %c0_i32_0 : i32, i32
  }
  func.func @transform_4(%arg0: i32) -> (i32, i32) {
    %c0_i32 = arith.constant 0 : i32
    %c0_i32_0 = arith.constant 0 : i32
    %c0_i32_1 = arith.constant 0 : i32
    return %c0_i32, %c0_i32_0 : i32, i32
  }
  func.func @transform_5(%arg0: i32) -> (i32, i32) {
    %c0_i32 = arith.constant 0 : i32
    %c0_i32_0 = arith.constant 0 : i32
    %c0_i32_1 = arith.constant 0 : i32
    return %c0_i32, %c0_i32_0 : i32, i32
  }
  func.func @transform_6(%arg0: i32) -> (i32, i32) {
    %c0_i32 = arith.constant 0 : i32
    %c0_i32_0 = arith.constant 0 : i32
    %c0_i32_1 = arith.constant 0 : i32
    return %c0_i32, %c0_i32_0 : i32, i32
  }
  func.func @transform_7(%arg0: i32) -> (i32, i32) {
    %c0_i32 = arith.constant 0 : i32
    %c0_i32_0 = arith.constant 0 : i32
    %c0_i32_1 = arith.constant 0 : i32
    return %c0_i32, %c0_i32_0 : i32, i32
  }
  func.func @transform_8(%arg0: i32) -> (i32, i32) {
    %c0_i32 = arith.constant 0 : i32
    %c0_i32_0 = arith.constant 0 : i32
    %c0_i32_1 = arith.constant 0 : i32
    return %c0_i32, %c0_i32_0 : i32, i32
  }
  func.func @transform_9(%arg0: i32) -> (i32, i32) {
    %c0_i32 = arith.constant 0 : i32
    %c0_i32_0 = arith.constant 0 : i32
    return %arg0, %c0_i32 : i32, i32
  }
}

</mosaic_0001>

<bundles_post_ra>
// kernel: key_network_forward.1
= control target key start
LH: loop header
LB: loop body
LE: loop exit
PB: predicated region body
PF: predicated region fallthrough
CT: control target
= control target key end

     0   :  { %s2463_s30 = smov 0   ;;  %s3323_s0 = inlined_call_operand.vmem [shape: f32[2048,64], index: 0, kind: input, shape index: {}]   ;;  %s3324_s1 = inlined_call_operand.vmem [shape: f32[2048,44], index: 1, kind: input, shape index: {}]   ;;  %s3325_s2 = inlined_call_operand.vmem [shape: f32[64,128], index: 2, kind: input, shape index: {}]   ;;  %s3326_s3 = inlined_call_operand.vmem [shape: f32[44,128], index: 3, kind: input, shape index: {}]   ;;  %s3327_s4 = inlined_call_operand.vmem [shape: f32[1,128], index: 4, kind: input, shape index: {}]   ;;  %s3328_s5 = inlined_call_operand.vmem [shape: f32[128,128], index: 5, kind: input, shape index: {}]   ;;  %s3329_s6 = inlined_call_operand.vmem [shape: f32[1,128], index: 6, kind: input, shape index: {}]   ;;  %s3330_s7 = inlined_call_operand.vmem [shape: f32[128,64], index: 7, kind: input, shape index: {}]   ;;  %s3331_s8 = inlined_call_operand.vmem [shape: f32[1,64], index: 8, kind: input, shape index: {}]   ;;  %s3332_s9 = inlined_call_operand.vmem [shape: f32[2048,64], index: 9, kind: output, shape index: {}]  }
   0x1 LB: > { %s2158_s10 = sadd.s32 4294967295, %s2411_s30   ;;  %p2162_p0 = scmp.ge.s32.totalorder %s2411_s30, 1  ;;  %s2411_s30 = sphi %s2463_s30, %s19_s30  }
   0x2   : > { %p299_p1 = scmp.lt.s32.totalorder %s2411_s30, 5 }
   0x4   : > { %p300_p2 = pnand %p2162_p0, %p299_p1 }
   0x5   : > { %s2163_s17 = sshll.u32 (!%p300_p2), %s2158_s10, 6 }
   0x6   : > { %303 = sbr.rel (%p300_p2) target bundleno = 937 (0x3a9), region = 56  ;;  %p341_p3 = scmp.lt.s32.totalorder (!%p300_p2), %s2163_s17, 255 }
   0xb   : > { %v499_v0 = vld [vmem:[%s3326_s3 + $0x28] sm:$0xf]  ;;  %vm693_vm0 = vcmask 1043456   ;;  %v429_v1 = vld [vmem:[%s3325_s2 + $0x38] sm:$0xff]  ;;  %v498_v2 = vld [vmem:[%s3326_s3 + $0x20] sm:$0xff]  ;;  %s3334_s17 = smov (!%p341_p3, %s2163_s17), 255 }
   0xc   : > { %2169 = vmatpush.msk.msra.mxu0 %vm693_vm0, %v499_v0  ;;  %1107 = vmatpush.msra.mxu1 %v429_v1  ;;  %v428_v3 = vld [vmem:[%s3325_s2 + $0x30] sm:$0xff]  ;;  %v497_v4 = vld [vmem:[%s3326_s3 + $0x18] sm:$0xff]  ;;  %v427_v5 = vld [vmem:[%s3325_s2 + $0x28] sm:$0xff]  ;;  %s2495_s28 = sshll.u32 %s3334_s17, 3  ;;  %vm500_vm1 = vcmask 359424   ;;  %vm906_vm2 = vcmask 523264  }
   0xd   : > { %v496_v6 = vld [vmem:[%s3326_s3 + $0x10] sm:$0xff]  ;;  %v426_v7 = vld [vmem:[%s3325_s2 + $0x20] sm:$0xff]  ;;  %v495_v8 = vld [vmem:[%s3326_s3 + $0x8] sm:$0xff]  ;;  %s2507_s15 = scalar_lea.vmem %s3324_s1, %s2495_s28  ;;  %s2523_s24 = scalar_lea.vmem %s3323_s0, %s2495_s28 }
   0xe   : > { %708 = vmatpush.msra.mxu0 %v498_v2  ;;  %1108 = vmatpush.msra.mxu1 %v428_v3  ;;  %v425_v9 = vld [vmem:[%s3325_s2 + $0x18] sm:$0xff]  ;;  %v494_v10 = vld [vmem:[%s3326_s3] sm:$0xff]  ;;  %v424_v11 = vld [vmem:[%s3325_s2 + $0x10] sm:$0xff]  ;;  %s2909_s12 = scalar_lea.vmem %s3332_s9, %s2495_s28 }
   0xf   : > { %v430_v12 = vld [vmem:[%s2507_s15] sm:$0xff]  ;;  %v423_v13 = vld [vmem:[%s3325_s2 + $0x8] sm:$0xff]  ;;  %v432_v18 = vld [vmem:[%s2507_s15 + $0x10] sm:$0xff] }
  0x10   : > { %709 = vmatpush.msra.mxu0 %v497_v4  ;;  %1109 = vmatpush.msra.mxu1 %v427_v5  ;;  %v422_v14 = vld [vmem:[%s3325_s2] sm:$0xff]  ;;  %v431_v16 = vld [vmem:[%s2507_s15 + $0x8] sm:$0xff]  ;;  %v360_v19 = vld [vmem:[%s2523_s24 + $0x10] sm:$0xff] }
  0x11   : > { %v358_v15 = vld [vmem:[%s2523_s24] sm:$0xff]  ;;  %v359_v17 = vld [vmem:[%s2523_s24 + $0x8] sm:$0xff]  ;;  %v433_v20 = vld [vmem:[%s2507_s15 + $0x18] sm:$0xff] }
  0x12   : > { %710 = vmatpush.msra.mxu0 %v496_v6  ;;  %1110 = vmatpush.msra.mxu1 %v426_v7  ;;  %v361_v21 = vld [vmem:[%s2523_s24 + $0x18] sm:$0xff]  ;;  %v434_v22 = vld [vmem:[%s2507_s15 + $0x20] sm:$0xff]  ;;  %v435_v24 = vld [vmem:[%s2507_s15 + $0x28] sm:$0xff] }
  0x13   : > { %v362_v23 = vld [vmem:[%s2523_s24 + $0x20] sm:$0xff]  ;;  %v363_v25 = vld [vmem:[%s2523_s24 + $0x28] sm:$0xff]  ;;  %v436_v26 = vld [vmem:[%s2507_s15 + $0x30] sm:$0xff] }
  0x14   : > { %711 = vmatpush.msra.mxu0 %v495_v8  ;;  %1111 = vmatpush.msra.mxu1 %v425_v9  ;;  %v364_v27 = vld [vmem:[%s2523_s24 + $0x30] sm:$0xff]  ;;  %v437_v28 = vld [vmem:[%s2507_s15 + $0x38] sm:$0xff]  ;;  %v438_v30 = vld [vmem:[%s2507_s15 + $0x40] sm:$0xff] }
  0x15   : > { %v365_v29 = vld [vmem:[%s2523_s24 + $0x38] sm:$0xff]  ;;  %v366_v31 = vld [vmem:[%s2523_s24 + $0x40] sm:$0xff]  ;;  %v439_v32 = vld [vmem:[%s2507_s15 + $0x48] sm:$0xff] }
  0x16   : > { %712 = vmatpush.msra.mxu0 %v494_v10  ;;  %1112 = vmatpush.msra.mxu1 %v424_v11  ;;  %v367_v33 = vld [vmem:[%s2523_s24 + $0x48] sm:$0xff]  ;;  %v440_v34 = vld [vmem:[%s2507_s15 + $0x50] sm:$0xff]  ;;  %v1455_v35 = vld [vmem:[%s3328_s5 + $0x78] sm:$0xff] }
  0x17   : > { %2170 = vmatmul.msk.f32.vlgmr.msra.gmra.mxu0 %vm500_vm1, %v430_v12  ;;  %v1454_v36 = vld [vmem:[%s3328_s5 + $0x70] sm:$0xff]  ;;  %2300 = vmatpush.msra.mxu2 %v1455_v35  ;;  %v1453_v38 = vld [vmem:[%s3328_s5 + $0x68] sm:$0xff]  ;;  %v1452_v39 = vld [vmem:[%s3328_s5 + $0x60] sm:$0xff] }
  0x18   : > { %1113 = vmatpush.msra.mxu1 %v423_v13  ;;  %v368_v37 = vld [vmem:[%s2523_s24 + $0x50] sm:$0xff]  ;;  %1460 = vmatpush.msrb.mxu0 %v1455_v35  ;;  %v441_v40 = vld [vmem:[%s2507_s15 + $0x58] sm:$0xff]  ;;  %v1449_v44 = vld [vmem:[%s3328_s5 + $0x48] sm:$0xff] }
  0x19   : > { %2301 = vmatpush.msra.mxu2 %v1454_v36  ;;  %v1451_v41 = vld [vmem:[%s3328_s5 + $0x58] sm:$0xff]  ;;  %v1450_v42 = vld [vmem:[%s3328_s5 + $0x50] sm:$0xff]  ;;  %v442_v45 = vld [vmem:[%s2507_s15 + $0x60] sm:$0xff] }
  0x1a   : > { %1114 = vmatpush.msra.mxu1 %v422_v14  ;;  %1461 = vmatpush.msrb.mxu0 %v1454_v36  ;;  %v369_v43 = vld [vmem:[%s2523_s24 + $0x58] sm:$0xff]  ;;  %v1448_v46 = vld [vmem:[%s3328_s5 + $0x40] sm:$0xff]  ;;  %v1446_v49 = vld [vmem:[%s3328_s5 + $0x30] sm:$0xff] }
  0x1b   : > { %2234 = vmatmul.msk.f32.vlgmr.msra.gmra.mxu1 %vm906_vm2, %v358_v15  ;;  %2302 = vmatpush.msra.mxu2 %v1453_v38  ;;  %v1447_v47 = vld [vmem:[%s3328_s5 + $0x38] sm:$0xff]  ;;  %v370_v48 = vld [vmem:[%s2523_s24 + $0x60] sm:$0xff]  ;;  %v1445_v50 = vld [vmem:[%s3328_s5 + $0x28] sm:$0xff] }
  0x1c   : > { %1462 = vmatpush.msrb.mxu0 %v1453_v38  ;;  %v443_v51 = vld [vmem:[%s2507_s15 + $0x68] sm:$0xff]  ;;  %v1444_v52 = vld [vmem:[%s3328_s5 + $0x20] sm:$0xff]  ;;  %v1443_v53 = vld [vmem:[%s3328_s5 + $0x18] sm:$0xff] }
  0x1d   : > { %2303 = vmatpush.msra.mxu2 %v1452_v39  ;;  %v371_v54 = vld [vmem:[%s2523_s24 + $0x68] sm:$0xff]  ;;  %v1442_v55 = vld [vmem:[%s3328_s5 + $0x10] sm:$0xff]  ;;  %v1440_v58 = vld [vmem:[%s3328_s5] sm:$0xff] }
  0x1e   : > { %1463 = vmatpush.msrb.mxu0 %v1452_v39  ;;  %v1441_v56 = vld [vmem:[%s3328_s5 + $0x8] sm:$0xff]  ;;  %v444_v57 = vld [vmem:[%s2507_s15 + $0x70] sm:$0xff]  ;;  %v445_v60 = vld [vmem:[%s2507_s15 + $0x78] sm:$0xff] }
  0x1f   : > { %2171 = vmatmul.msk.f32.gmra.mxu0 %vm500_vm1, %v431_v16  ;;  %2304 = vmatpush.msra.mxu2 %v1451_v41  ;;  %v372_v59 = vld [vmem:[%s2523_s24 + $0x70] sm:$0xff]  ;;  %v373_v61 = vld [vmem:[%s2523_s24 + $0x78] sm:$0xff]  ;;  %v446_v63 = vld [vmem:[%s2507_s15 + $0x80] sm:$0xff] }
  0x20   : > { %1464 = vmatpush.msrb.mxu0 %v1451_v41  ;;  %v374_v1 = vld [vmem:[%s2523_s24 + $0x80] sm:$0xff]  ;;  %v447_v3 = vld [vmem:[%s2507_s15 + $0x88] sm:$0xff]  ;;  %v448_v10 = vld [vmem:[%s2507_s15 + $0x90] sm:$0xff] }
  0x21   : > { %2305 = vmatpush.msra.mxu2 %v1450_v42  ;;  %v375_v5 = vld [vmem:[%s2523_s24 + $0x88] sm:$0xff]  ;;  %v2653_v6 = vld [vmem:[%s3327_s4] ss:$0 sm:$0xff]  ;;  %v376_v13 = vld [vmem:[%s2523_s24 + $0x90] sm:$0xff] }
  0x22   : > { %1465 = vmatpush.msrb.mxu0 %v1450_v42  ;;  %v452_v38 = vld [vmem:[%s2507_s15 + $0xb0] sm:$0xff] }
  0x23   : > { %2235 = vmatmul.msk.f32.gmra.mxu1 %vm906_vm2, %v359_v17  ;;  %2306 = vmatpush.msra.mxu2 %v1449_v44  ;;  %v449_v17 = vld [vmem:[%s2507_s15 + $0x98] sm:$0xff]  ;;  %v380_v41 = vld [vmem:[%s2523_s24 + $0xb0] sm:$0xff] }
  0x24   : > { %1466 = vmatpush.msrb.mxu0 %v1449_v44 }
  0x25   : > { %2307 = vmatpush.msra.mxu2 %v1448_v46 }
  0x26   : > { %1467 = vmatpush.msrb.mxu0 %v1448_v46 }
  0x27   : > { %2172 = vmatmul.msk.f32.gmra.mxu0 %vm500_vm1, %v432_v18  ;;  %2308 = vmatpush.msra.mxu2 %v1447_v47 }
  0x28   : > { %1468 = vmatpush.msrb.mxu0 %v1447_v47 }
  0x29   : > { %2309 = vmatpush.msra.mxu2 %v1446_v49 }
  0x2a   : > { %1469 = vmatpush.msrb.mxu0 %v1446_v49 }
  0x2b   : > { %2236 = vmatmul.msk.f32.gmra.mxu1 %vm906_vm2, %v360_v19  ;;  %2310 = vmatpush.msra.mxu2 %v1445_v50 }
  0x2c   : > { %1470 = vmatpush.msrb.mxu0 %v1445_v50 }
  0x2d   : > { %2311 = vmatpush.msra.mxu2 %v1444_v52 }
  0x2e   : > { %1471 = vmatpush.msrb.mxu0 %v1444_v52  ;;  %v454_v52 = vld [vmem:[%s2507_s15 + $0xc0] sm:$0xff] }
  0x2f   : > { %2173 = vmatmul.msk.f32.gmra.mxu0 %vm500_vm1, %v433_v20  ;;  %2312 = vmatpush.msra.mxu2 %v1443_v53  ;;  %v377_v20 = vld [vmem:[%s2523_s24 + $0x98] sm:$0xff] }
  0x30   : > { %1472 = vmatpush.msrb.mxu0 %v1443_v53 }
  0x31   : > { %2313 = vmatpush.msra.mxu2 %v1442_v55 }
  0x32   : > { %1473 = vmatpush.msrb.mxu0 %v1442_v55  ;;  %v382_v55 = vld [vmem:[%s2523_s24 + $0xc0] sm:$0xff] }
  0x33   : > { %2237 = vmatmul.msk.f32.gmra.mxu1 %vm906_vm2, %v361_v21  ;;  %2314 = vmatpush.msra.mxu2 %v1441_v56 }
  0x34   : > { %1474 = vmatpush.msrb.mxu0 %v1441_v56 }
  0x35   : > { %2315 = vmatpush.msra.mxu2 %v1440_v58 }
  0x36   : > { %1475 = vmatpush.msrb.mxu0 %v1440_v58 }
  0x37   : > { %2174 = vmatmul.msk.f32.gmra.mxu0 %vm500_vm1, %v434_v22 }
  0x3b   : > { %2238 = vmatmul.msk.f32.gmra.mxu1 %vm906_vm2, %v362_v23 }
  0x3f   : > { %2175 = vmatmul.msk.f32.gmra.mxu0 %vm500_vm1, %v435_v24  ;;  %v450_v24 = vld [vmem:[%s2507_s15 + $0xa0] sm:$0xff] }
  0x43   : > { %2239 = vmatmul.msk.f32.gmra.mxu1 %vm906_vm2, %v363_v25 }
  0x47   : > { %2176 = vmatmul.msk.f32.gmra.mxu0 %vm500_vm1, %v436_v26 }
  0x4b   : > { %2240 = vmatmul.msk.f32.gmra.mxu1 %vm906_vm2, %v364_v27  ;;  %v378_v27 = vld [vmem:[%s2523_s24 + $0xa0] sm:$0xff] }
  0x4f   : > { %2177 = vmatmul.msk.f32.gmra.mxu0 %vm500_vm1, %v437_v28 }
  0x53   : > { %2241 = vmatmul.msk.f32.gmra.mxu1 %vm906_vm2, %v365_v29 }
  0x57   : > { %2178 = vmatmul.msk.f32.gmra.mxu0 %vm500_vm1, %v438_v30 }
  0x5b   : > { %2242 = vmatmul.msk.f32.gmra.mxu1 %vm906_vm2, %v366_v31  ;;  %v451_v31 = vld [vmem:[%s2507_s15 + $0xa8] sm:$0xff] }
  0x5f   : > { %2179 = vmatmul.msk.f32.gmra.mxu0 %vm500_vm1, %v439_v32 }
  0x63   : > { %2243 = vmatmul.msk.f32.gmra.mxu1 %vm906_vm2, %v367_v33 }
  0x67   : > { %2180 = vmatmul.msk.f32.gmra.mxu0 %vm500_vm1, %v440_v34  ;;  %v379_v34 = vld [vmem:[%s2523_s24 + $0xa8] sm:$0xff] }
  0x6b   : > { %2244 = vmatmul.msk.f32.gmra.mxu1 %vm906_vm2, %v368_v37 }
  0x6f   : > { %2181 = vmatmul.msk.f32.gmra.mxu0 %vm500_vm1, %v441_v40 }
  0x73   : > { %2245 = vmatmul.msk.f32.gmra.mxu1 %vm906_vm2, %v369_v43 }
  0x77   : > { %2182 = vmatmul.msk.f32.gmra.mxu0 %vm500_vm1, %v442_v45  ;;  %v453_v45 = vld [vmem:[%s2507_s15 + $0xb8] sm:$0xff] }
  0x7b   : > { %2246 = vmatmul.msk.f32.gmra.mxu1 %vm906_vm2, %v370_v48  ;;  %v381_v48 = vld [vmem:[%s2523_s24 + $0xb8] sm:$0xff] }
  0x7f   : > { %2183 = vmatmul.msk.f32.gmra.mxu0 %vm500_vm1, %v443_v51 }
  0x83   : > { %2247 = vmatmul.msk.f32.gmra.mxu1 %vm906_vm2, %v371_v54 }
  0x87   : > { %2184 = vmatmul.msk.f32.gmra.mxu0 %vm500_vm1, %v444_v57 }
  0x8b   : > { %2248 = vmatmul.msk.f32.gmra.mxu1 %vm906_vm2, %v372_v59  ;;  %v455_v59 = vld [vmem:[%s2507_s15 + $0xc8] sm:$0xff] }
  0x8f   : > { %2185 = vmatmul.msk.f32.gmra.mxu0 %vm500_vm1, %v445_v60 }
  0x93   : > { %2249 = vmatmul.msk.f32.gmra.mxu1 %vm906_vm2, %v373_v61 }
  0x94   : > { %v2639_v62 = vpop.f32.mrf.mxu0 }
  0x97   : > { %2186 = vmatmul.msk.f32.gmra.mxu0 %vm500_vm1, %v446_v63  ;;  %v383_v63 = vld [vmem:[%s2523_s24 + $0xc8] sm:$0xff] }
  0x98   : > { %v2643_v0 = vpop.f32.mrf.mxu1 }
  0x9b   : > { %2250 = vmatmul.msk.f32.gmra.mxu1 %vm906_vm2, %v374_v1 }
  0x9c   : > { %v717_v2 = vpop.f32.mrf.mxu0 }
  0x9f   : > { %2187 = vmatmul.msk.f32.gmra.mxu0 %vm500_vm1, %v447_v3 }
  0xa0   : > { %v1119_v4 = vpop.f32.mrf.mxu1 }
  0xa1   : > { %v1120_v7 = vadd.f32 %v1119_v4, %v717_v2  ;;  %v456_v4 = vld [vmem:[%s2507_s15 + $0xd0] sm:$0xff] }
  0xa3   : > { %2251 = vmatmul.msk.f32.gmra.mxu1 %vm906_vm2, %v375_v5  ;;  %v1313_v8 = vadd.f32 %v2653_v6, %v1120_v7 }
  0xa4   : > { %v720_v9 = vpop.f32.mrf.mxu0 }
  0xa5   : > { %v1377_v11 = vmax.f32 %v1313_v8, 0.0  ;;  %v384_v8 = vld [vmem:[%s2523_s24 + $0xd0] sm:$0xff] }
  0xa7   : > { %2188 = vmatmul.msk.f32.gmra.mxu0 %vm500_vm1, %v448_v10  ;;  %1479 = vmatmul.f32.vlgmr.msra.gmra.mxu2 %v1377_v11 }
  0xa8   : > { %v1122_v12 = vpop.f32.mrf.mxu1 }
  0xa9   : > { %v1123_v14 = vadd.f32 %v1122_v12, %v720_v9  ;;  %v457_v12 = vld [vmem:[%s2507_s15 + $0xd8] sm:$0xff] }
  0xab   : > { %2252 = vmatmul.msk.f32.gmra.mxu1 %vm906_vm2, %v376_v13  ;;  %v1314_v15 = vadd.f32 %v2653_v6, %v1123_v14  ;;  %v1748_v14 = vld [vmem:[%s3330_s7 + $0x78] sm:$0xff] }
  0xac   : > { %v723_v16 = vpop.f32.mrf.mxu0  ;;  %2316 = vmatpush.msra.mxu3 %v1748_v14  ;;  %1753 = vmatpush.msrb.mxu1 %v1748_v14 }
  0xad   : > { %v1378_v18 = vmax.f32 %v1314_v15, 0.0 }
  0xaf   : > { %2189 = vmatmul.msk.f32.gmra.mxu0 %vm500_vm1, %v449_v17  ;;  %1482 = vmatmul.f32.gmra.mxu2 %v1378_v18  ;;  %v1747_v18 = vld [vmem:[%s3330_s7 + $0x70] sm:$0xff] }
  0xb0   : > { %v1125_v19 = vpop.f32.mrf.mxu1  ;;  %2317 = vmatpush.msra.mxu3 %v1747_v18  ;;  %1754 = vmatpush.msrb.mxu1 %v1747_v18  ;;  %v2790_v18 = vld [vmem:[%s3329_s6] ss:$0 sm:$0xff] }
  0xb1   : > { %v1126_v21 = vadd.f32 %v1125_v19, %v723_v16  ;;  %v385_v16 = vld [vmem:[%s2523_s24 + $0xd8] sm:$0xff] }
  0xb3   : > { %2253 = vmatmul.msk.f32.gmra.mxu1 %vm906_vm2, %v377_v20  ;;  %v1315_v22 = vadd.f32 %v2653_v6, %v1126_v21  ;;  %v1746_v20 = vld [vmem:[%s3330_s7 + $0x68] sm:$0xff] }
  0xb4   : > { %v726_v23 = vpop.f32.mrf.mxu0  ;;  %2318 = vmatpush.msra.mxu3 %v1746_v20  ;;  %1755 = vmatpush.msrb.mxu1 %v1746_v20  ;;  %v392_v20 = vld [vmem:[%s2523_s24 + $0x110] sm:$0xff] }
  0xb5   : > { %v1379_v25 = vmax.f32 %v1315_v22, 0.0  ;;  %v458_v22 = vld [vmem:[%s2507_s15 + $0xe0] sm:$0xff] }
  0xb7   : > { %2190 = vmatmul.msk.f32.gmra.mxu0 %vm500_vm1, %v450_v24  ;;  %1485 = vmatmul.f32.gmra.mxu2 %v1379_v25  ;;  %v1744_v25 = vld [vmem:[%s3330_s7 + $0x58] sm:$0xff] }
  0xb8   : > { %v1128_v26 = vpop.f32.mrf.mxu1 }
  0xb9   : > { %v1129_v28 = vadd.f32 %v1128_v26, %v726_v23  ;;  %v1745_v23 = vld [vmem:[%s3330_s7 + $0x60] sm:$0xff] }
  0xba   : > { %2319 = vmatpush.msra.mxu3 %v1745_v23  ;;  %1756 = vmatpush.msrb.mxu1 %v1745_v23 }
  0xbb   : > { %2254 = vmatmul.msk.f32.gmra.mxu1 %vm906_vm2, %v378_v27  ;;  %v1316_v29 = vadd.f32 %v2653_v6, %v1129_v28  ;;  %v386_v27 = vld [vmem:[%s2523_s24 + $0xe0] sm:$0xff] }
  0xbc   : > { %v729_v30 = vpop.f32.mrf.mxu0  ;;  %2320 = vmatpush.msra.mxu3 %v1744_v25  ;;  %1757 = vmatpush.msrb.mxu1 %v1744_v25 }
  0xbd   : > { %v1380_v32 = vmax.f32 %v1316_v29, 0.0  ;;  %v1743_v29 = vld [vmem:[%s3330_s7 + $0x50] sm:$0xff] }
  0xbe   : > { %2321 = vmatpush.msra.mxu3 %v1743_v29  ;;  %1758 = vmatpush.msrb.mxu1 %v1743_v29 }
  0xbf   : > { %2191 = vmatmul.msk.f32.gmra.mxu0 %vm500_vm1, %v451_v31  ;;  %1488 = vmatmul.f32.gmra.mxu2 %v1380_v32  ;;  %v1742_v31 = vld [vmem:[%s3330_s7 + $0x48] sm:$0xff] }
  0xc0   : > { %v1131_v33 = vpop.f32.mrf.mxu1  ;;  %2322 = vmatpush.msra.mxu3 %v1742_v31  ;;  %1759 = vmatpush.msrb.mxu1 %v1742_v31 }
  0xc1   : > { %v1132_v35 = vadd.f32 %v1131_v33, %v729_v30  ;;  %v459_v33 = vld [vmem:[%s2507_s15 + $0xe8] sm:$0xff] }
  0xc3   : > { %2255 = vmatmul.msk.f32.gmra.mxu1 %vm906_vm2, %v379_v34  ;;  %v1317_v36 = vadd.f32 %v2653_v6, %v1132_v35  ;;  %v1741_v34 = vld [vmem:[%s3330_s7 + $0x40] sm:$0xff] }
  0xc4   : > { %v732_v37 = vpop.f32.mrf.mxu0  ;;  %2323 = vmatpush.msra.mxu3 %v1741_v34  ;;  %1760 = vmatpush.msrb.mxu1 %v1741_v34 }
  0xc5   : > { %v1381_v39 = vmax.f32 %v1317_v36, 0.0  ;;  %v1740_v36 = vld [vmem:[%s3330_s7 + $0x38] sm:$0xff] }
  0xc6   : > { %2324 = vmatpush.msra.mxu3 %v1740_v36  ;;  %1761 = vmatpush.msrb.mxu1 %v1740_v36  ;;  %v466_v36 = vld [vmem:[%s2507_s15 + $0x120] sm:$0xff] }
  0xc7   : > { %2192 = vmatmul.msk.f32.gmra.mxu0 %vm500_vm1, %v452_v38  ;;  %1491 = vmatmul.f32.gmra.mxu2 %v1381_v39  ;;  %v387_v38 = vld [vmem:[%s2523_s24 + $0xe8] sm:$0xff] }
  0xc8   : > { %v1134_v40 = vpop.f32.mrf.mxu1 }
  0xc9   : > { %v1135_v42 = vadd.f32 %v1134_v40, %v732_v37  ;;  %v1739_v40 = vld [vmem:[%s3330_s7 + $0x30] sm:$0xff] }
  0xca   : > { %2325 = vmatpush.msra.mxu3 %v1739_v40  ;;  %1762 = vmatpush.msrb.mxu1 %v1739_v40  ;;  %v394_v40 = vld [vmem:[%s2523_s24 + $0x120] sm:$0xff] }
  0xcb   : > { %2256 = vmatmul.msk.f32.gmra.mxu1 %vm906_vm2, %v380_v41  ;;  %v1318_v43 = vadd.f32 %v2653_v6, %v1135_v42  ;;  %v1738_v42 = vld [vmem:[%s3330_s7 + $0x28] sm:$0xff] }
  0xcc   : > { %v735_v44 = vpop.f32.mrf.mxu0  ;;  %2326 = vmatpush.msra.mxu3 %v1738_v42  ;;  %1763 = vmatpush.msrb.mxu1 %v1738_v42 }
  0xcd   : > { %v1382_v46 = vmax.f32 %v1318_v43, 0.0 }
  0xcf   : > { %2193 = vmatmul.msk.f32.gmra.mxu0 %vm500_vm1, %v453_v45  ;;  %1494 = vmatmul.f32.gmra.mxu2 %v1382_v46  ;;  %v1737_v45 = vld [vmem:[%s3330_s7 + $0x20] sm:$0xff] }
  0xd0   : > { %v1137_v47 = vpop.f32.mrf.mxu1  ;;  %2327 = vmatpush.msra.mxu3 %v1737_v45  ;;  %1764 = vmatpush.msrb.mxu1 %v1737_v45 }
  0xd1   : > { %v1138_v49 = vadd.f32 %v1137_v47, %v735_v44  ;;  %v460_v44 = vld [vmem:[%s2507_s15 + $0xf0] sm:$0xff]  ;;  %v1736_v47 = vld [vmem:[%s3330_s7 + $0x18] sm:$0xff] }
  0xd2   : > { %2328 = vmatpush.msra.mxu3 %v1736_v47  ;;  %1765 = vmatpush.msrb.mxu1 %v1736_v47 }
  0xd3   : > { %2257 = vmatmul.msk.f32.gmra.mxu1 %vm906_vm2, %v381_v48  ;;  %v1319_v50 = vadd.f32 %v2653_v6, %v1138_v49  ;;  %v388_v49 = vld [vmem:[%s2523_s24 + $0xf0] sm:$0xff] }
  0xd4   : > { %v738_v51 = vpop.f32.mrf.mxu0 }
  0xd5   : > { %v1383_v53 = vmax.f32 %v1319_v50, 0.0 }
  0xd7   : > { %2194 = vmatmul.msk.f32.gmra.mxu0 %vm500_vm1, %v454_v52  ;;  %1497 = vmatmul.f32.gmra.mxu2 %v1383_v53  ;;  %v1734_v53 = vld [vmem:[%s3330_s7 + $0x8] sm:$0xff] }
  0xd8   : > { %v1140_v54 = vpop.f32.mrf.mxu1 }
  0xd9   : > { %v1141_v56 = vadd.f32 %v1140_v54, %v738_v51  ;;  %v1735_v51 = vld [vmem:[%s3330_s7 + $0x10] sm:$0xff] }
  0xda   : > { %2329 = vmatpush.msra.mxu3 %v1735_v51  ;;  %1766 = vmatpush.msrb.mxu1 %v1735_v51 }
  0xdb   : > { %2258 = vmatmul.msk.f32.gmra.mxu1 %vm906_vm2, %v382_v55  ;;  %v1320_v57 = vadd.f32 %v2653_v6, %v1141_v56  ;;  %v461_v55 = vld [vmem:[%s2507_s15 + $0xf8] sm:$0xff]  ;;  %v1733_v56 = vld [vmem:[%s3330_s7] sm:$0xff] }
  0xdc   : > { %v741_v58 = vpop.f32.mrf.mxu0  ;;  %2330 = vmatpush.msra.mxu3 %v1734_v53  ;;  %1767 = vmatpush.msrb.mxu1 %v1734_v53 }
  0xdd   : > { %v1384_v60 = vmax.f32 %v1320_v57, 0.0 }
  0xde   : > { %2331 = vmatpush.msra.mxu3 %v1733_v56  ;;  %1768 = vmatpush.msrb.mxu1 %v1733_v56  ;;  %v468_v56 = vld [vmem:[%s2507_s15 + $0x130] sm:$0xff] }
  0xdf   : > { %2195 = vmatmul.msk.f32.gmra.mxu0 %vm500_vm1, %v455_v59  ;;  %1500 = vmatmul.f32.gmra.mxu2 %v1384_v60  ;;  %v389_v59 = vld [vmem:[%s2523_s24 + $0xf8] sm:$0xff] }
  0xe0   : > { %v1143_v61 = vpop.f32.mrf.mxu1 }
  0xe1   : > { %v1144_v1 = vadd.f32 %v1143_v61, %v741_v58 }
  0xe3   : > { %2259 = vmatmul.msk.f32.gmra.mxu1 %vm906_vm2, %v383_v63  ;;  %v1321_v2 = vadd.f32 %v2653_v6, %v1144_v1  ;;  %v462_v1 = vld [vmem:[%s2507_s15 + $0x100] sm:$0xff] }
  0xe4   : > { %v744_v3 = vpop.f32.mrf.mxu0 }
  0xe5   : > { %v1385_v5 = vmax.f32 %v1321_v2, 0.0 }
  0xe7   : > { %2196 = vmatmul.msk.f32.gmra.mxu0 %vm500_vm1, %v456_v4  ;;  %1503 = vmatmul.f32.gmra.mxu2 %v1385_v5  ;;  %v390_v4 = vld [vmem:[%s2523_s24 + $0x100] sm:$0xff] }
  0xe8   : > { %v1146_v7 = vpop.f32.mrf.mxu1 }
  0xe9   : > { %v1147_v9 = vadd.f32 %v1146_v7, %v744_v3 }
  0xeb   : > { %2260 = vmatmul.msk.f32.gmra.mxu1 %vm906_vm2, %v384_v8  ;;  %v1322_v10 = vadd.f32 %v2653_v6, %v1147_v9  ;;  %v463_v9 = vld [vmem:[%s2507_s15 + $0x108] sm:$0xff] }
  0xec   : > { %v747_v11 = vpop.f32.mrf.mxu0 }
  0xed   : > { %v1386_v13 = vmax.f32 %v1322_v10, 0.0 }
  0xef   : > { %2197 = vmatmul.msk.f32.gmra.mxu0 %vm500_vm1, %v457_v12  ;;  %1506 = vmatmul.f32.gmra.mxu2 %v1386_v13  ;;  %v391_v12 = vld [vmem:[%s2523_s24 + $0x108] sm:$0xff] }
  0xf0   : > { %v1149_v15 = vpop.f32.mrf.mxu1 }
  0xf1   : > { %v1150_v17 = vadd.f32 %v1149_v15, %v747_v11 }
  0xf3   : > { %2261 = vmatmul.msk.f32.gmra.mxu1 %vm906_vm2, %v385_v16  ;;  %v1323_v19 = vadd.f32 %v2653_v6, %v1150_v17  ;;  %v464_v16 = vld [vmem:[%s2507_s15 + $0x110] sm:$0xff] }
  0xf4   : > { %v750_v21 = vpop.f32.mrf.mxu0 }
  0xf5   : > { %v1387_v24 = vmax.f32 %v1323_v19, 0.0 }
  0xf7   : > { %2198 = vmatmul.msk.f32.gmra.mxu0 %vm500_vm1, %v458_v22  ;;  %1509 = vmatmul.f32.gmra.mxu2 %v1387_v24 }
  0xf8   : > { %v1152_v26 = vpop.f32.mrf.mxu1 }
  0xf9   : > { %v1153_v28 = vadd.f32 %v1152_v26, %v750_v21  ;;  %v465_v26 = vld [vmem:[%s2507_s15 + $0x118] sm:$0xff] }
  0xfb   : > { %2262 = vmatmul.msk.f32.gmra.mxu1 %vm906_vm2, %v386_v27  ;;  %v1324_v30 = vadd.f32 %v2653_v6, %v1153_v28 }
  0xfc   : > { %v753_v32 = vpop.f32.mrf.mxu0 }
  0xfd   : > { %v1388_v35 = vmax.f32 %v1324_v30, 0.0  ;;  %v393_v30 = vld [vmem:[%s2523_s24 + $0x118] sm:$0xff] }
  0xff   : > { %2199 = vmatmul.msk.f32.gmra.mxu0 %vm500_vm1, %v459_v33  ;;  %1512 = vmatmul.f32.gmra.mxu2 %v1388_v35 }
 0x100   : > { %v1155_v37 = vpop.f32.mrf.mxu1 }
 0x101   : > { %v1156_v39 = vadd.f32 %v1155_v37, %v753_v32 }
 0x103   : > { %2263 = vmatmul.msk.f32.gmra.mxu1 %vm906_vm2, %v387_v38  ;;  %v1325_v41 = vadd.f32 %v2653_v6, %v1156_v39 }
 0x104   : > { %v756_v43 = vpop.f32.mrf.mxu0 }
 0x105   : > { %v1389_v46 = vmax.f32 %v1325_v41, 0.0 }
 0x107   : > { %2200 = vmatmul.msk.f32.gmra.mxu0 %vm500_vm1, %v460_v44  ;;  %1515 = vmatmul.f32.gmra.mxu2 %v1389_v46  ;;  %v467_v46 = vld [vmem:[%s2507_s15 + $0x128] sm:$0xff] }
 0x108   : > { %v1158_v48 = vpop.f32.mrf.mxu1 }
 0x109   : > { %v1159_v50 = vadd.f32 %v1158_v48, %v756_v43 }
 0x10b   : > { %2264 = vmatmul.msk.f32.gmra.mxu1 %vm906_vm2, %v388_v49  ;;  %v1326_v52 = vadd.f32 %v2653_v6, %v1159_v50  ;;  %v395_v50 = vld [vmem:[%s2523_s24 + $0x128] sm:$0xff] }
 0x10c   : > { %v759_v54 = vpop.f32.mrf.mxu0 }
 0x10d   : > { %v1390_v57 = vmax.f32 %v1326_v52, 0.0 }
 0x10f   : > { %2201 = vmatmul.msk.f32.gmra.mxu0 %vm500_vm1, %v461_v55  ;;  %1518 = vmatmul.f32.gmra.mxu2 %v1390_v57 }
 0x110   : > { %v1161_v58 = vpop.f32.mrf.mxu1 }
 0x111   : > { %v1162_v60 = vadd.f32 %v1161_v58, %v759_v54 }
 0x113   : > { %2265 = vmatmul.msk.f32.gmra.mxu1 %vm906_vm2, %v389_v59  ;;  %v1327_v61 = vadd.f32 %v2653_v6, %v1162_v60  ;;  %v396_v60 = vld [vmem:[%s2523_s24 + $0x130] sm:$0xff] }
 0x114   : > { %v762_v63 = vpop.f32.mrf.mxu0 }
 0x115   : > { %v1391_v2 = vmax.f32 %v1327_v61, 0.0 }
 0x117   : > { %2202 = vmatmul.msk.f32.gmra.mxu0 %vm500_vm1, %v462_v1  ;;  %1521 = vmatmul.f32.gmra.mxu2 %v1391_v2 }
 0x118   : > { %v1164_v3 = vpop.f32.mrf.mxu1 }
 0x119   : > { %v1165_v5 = vadd.f32 %v1164_v3, %v762_v63 }
 0x11b   : > { %2266 = vmatmul.msk.f32.gmra.mxu1 %vm906_vm2, %v390_v4  ;;  %v1328_v7 = vadd.f32 %v2653_v6, %v1165_v5  ;;  %v469_v4 = vld [vmem:[%s2507_s15 + $0x138] sm:$0xff] }
 0x11c   : > { %v765_v8 = vpop.f32.mrf.mxu0 }
 0x11d   : > { %v1392_v10 = vmax.f32 %v1328_v7, 0.0 }
 0x11f   : > { %2203 = vmatmul.msk.f32.gmra.mxu0 %vm500_vm1, %v463_v9  ;;  %1524 = vmatmul.f32.gmra.mxu2 %v1392_v10  ;;  %v397_v9 = vld [vmem:[%s2523_s24 + $0x138] sm:$0xff] }
 0x120   : > { %v1167_v11 = vpop.f32.mrf.mxu1 }
 0x121   : > { %v1168_v13 = vadd.f32 %v1167_v11, %v765_v8 }
 0x123   : > { %2267 = vmatmul.msk.f32.gmra.mxu1 %vm906_vm2, %v391_v12  ;;  %v1329_v14 = vadd.f32 %v2653_v6, %v1168_v13 }
 0x124   : > { %v768_v15 = vpop.f32.mrf.mxu0 }
 0x125   : > { %v1393_v17 = vmax.f32 %v1329_v14, 0.0 }
 0x127   : > { %2204 = vmatmul.msk.f32.gmra.mxu0 %vm500_vm1, %v464_v16  ;;  %1527 = vmatmul.f32.gmra.mxu2 %v1393_v17 }
 0x128   : > { %v1170_v19 = vpop.f32.mrf.mxu1 }
 0x129   : > { %v1171_v21 = vadd.f32 %v1170_v19, %v768_v15  ;;  %v470_v15 = vld [vmem:[%s2507_s15 + $0x140] sm:$0xff] }
 0x12a   : > { %v1480_v22 = vpop.f32.mrf.mxu2 }
 0x12b   : > { %v1481_v23 = vadd.f32 %v2790_v18, %v1480_v22  ;;  %2268 = vmatmul.msk.f32.gmra.mxu1 %vm906_vm2, %v392_v20  ;;  %v1330_v24 = vadd.f32 %v2653_v6, %v1171_v21  ;;  %v398_v20 = vld [vmem:[%s2523_s24 + $0x140] sm:$0xff] }
 0x12c   : > { %v771_v25 = vpop.f32.mrf.mxu0 }
 0x12d   : > { %v1394_v27 = vmax.f32 %v1330_v24, 0.0  ;;  %v1670_v28 = vmax.f32 %v1481_v23, 0.0 }
 0x12f   : > { %2205 = vmatmul.msk.f32.gmra.mxu0 %vm500_vm1, %v465_v26  ;;  %1530 = vmatmul.f32.gmra.mxu2 %v1394_v27  ;;  %v471_v26 = vld [vmem:[%s2507_s15 + $0x148] sm:$0xff] }
 0x130   : > { %1772 = vmatmul.f32.vlgmr.msra.gmra.mxu3 %v1670_v28  ;;  %v1173_v29 = vpop.f32.mrf.mxu1 }
 0x131   : > { %v1174_v31 = vadd.f32 %v1173_v29, %v771_v25 }
 0x132   : > { %v1483_v32 = vpop.f32.mrf.mxu2 }
 0x133   : > { %v1484_v33 = vadd.f32 %v2790_v18, %v1483_v32  ;;  %2269 = vmatmul.msk.f32.gmra.mxu1 %vm906_vm2, %v393_v30  ;;  %v1331_v34 = vadd.f32 %v2653_v6, %v1174_v31  ;;  %v399_v30 = vld [vmem:[%s2523_s24 + $0x148] sm:$0xff] }
 0x134   : > { %v774_v35 = vpop.f32.mrf.mxu0 }
 0x135   : > { %v1395_v37 = vmax.f32 %v1331_v34, 0.0  ;;  %v1671_v38 = vmax.f32 %v1484_v33, 0.0 }
 0x137   : > { %2206 = vmatmul.msk.f32.gmra.mxu0 %vm500_vm1, %v466_v36  ;;  %1533 = vmatmul.f32.gmra.mxu2 %v1395_v37  ;;  %v472_v36 = vld [vmem:[%s2507_s15 + $0x150] sm:$0xff] }
 0x138   : > { %1775 = vmatmul.f32.gmra.mxu3 %v1671_v38  ;;  %v1176_v39 = vpop.f32.mrf.mxu1 }
 0x139   : > { %v1177_v41 = vadd.f32 %v1176_v39, %v774_v35 }
 0x13a   : > { %v1486_v42 = vpop.f32.mrf.mxu2 }
 0x13b   : > { %v1487_v43 = vadd.f32 %v2790_v18, %v1486_v42  ;;  %2270 = vmatmul.msk.f32.gmra.mxu1 %vm906_vm2, %v394_v40  ;;  %v1332_v44 = vadd.f32 %v2653_v6, %v1177_v41  ;;  %v400_v40 = vld [vmem:[%s2523_s24 + $0x150] sm:$0xff] }
 0x13c   : > { %v777_v45 = vpop.f32.mrf.mxu0 }
 0x13d   : > { %v1396_v47 = vmax.f32 %v1332_v44, 0.0  ;;  %v1672_v48 = vmax.f32 %v1487_v43, 0.0 }
 0x13f   : > { %2207 = vmatmul.msk.f32.gmra.mxu0 %vm500_vm1, %v467_v46  ;;  %1536 = vmatmul.f32.gmra.mxu2 %v1396_v47  ;;  %v473_v46 = vld [vmem:[%s2507_s15 + $0x158] sm:$0xff] }
 0x140   : > { %1778 = vmatmul.f32.gmra.mxu3 %v1672_v48  ;;  %v1179_v49 = vpop.f32.mrf.mxu1 }
 0x141   : > { %v1180_v51 = vadd.f32 %v1179_v49, %v777_v45 }
 0x142   : > { %v1489_v52 = vpop.f32.mrf.mxu2 }
 0x143   : > { %v1490_v53 = vadd.f32 %v2790_v18, %v1489_v52  ;;  %2271 = vmatmul.msk.f32.gmra.mxu1 %vm906_vm2, %v395_v50  ;;  %v1333_v54 = vadd.f32 %v2653_v6, %v1180_v51  ;;  %v401_v50 = vld [vmem:[%s2523_s24 + $0x158] sm:$0xff] }
 0x144   : > { %v780_v55 = vpop.f32.mrf.mxu0 }
 0x145   : > { %v1397_v57 = vmax.f32 %v1333_v54, 0.0  ;;  %v1673_v58 = vmax.f32 %v1490_v53, 0.0 }
 0x147   : > { %2208 = vmatmul.msk.f32.gmra.mxu0 %vm500_vm1, %v468_v56  ;;  %1539 = vmatmul.f32.gmra.mxu2 %v1397_v57  ;;  %v474_v56 = vld [vmem:[%s2507_s15 + $0x160] sm:$0xff] }
 0x148   : > { %1781 = vmatmul.f32.gmra.mxu3 %v1673_v58  ;;  %v1182_v59 = vpop.f32.mrf.mxu1 }
 0x149   : > { %v1183_v61 = vadd.f32 %v1182_v59, %v780_v55 }
 0x14a   : > { %v1492_v63 = vpop.f32.mrf.mxu2 }
 0x14b   : > { %v1493_v1 = vadd.f32 %v2790_v18, %v1492_v63  ;;  %2272 = vmatmul.msk.f32.gmra.mxu1 %vm906_vm2, %v396_v60  ;;  %v1334_v2 = vadd.f32 %v2653_v6, %v1183_v61  ;;  %v402_v60 = vld [vmem:[%s2523_s24 + $0x160] sm:$0xff] }
 0x14c   : > { %v783_v3 = vpop.f32.mrf.mxu0 }
 0x14d   : > { %v1398_v5 = vmax.f32 %v1334_v2, 0.0  ;;  %v1674_v7 = vmax.f32 %v1493_v1, 0.0 }
 0x14f   : > { %2209 = vmatmul.msk.f32.gmra.mxu0 %vm500_vm1, %v469_v4  ;;  %1542 = vmatmul.f32.gmra.mxu2 %v1398_v5  ;;  %v475_v4 = vld [vmem:[%s2507_s15 + $0x168] sm:$0xff] }
 0x150   : > { %1784 = vmatmul.f32.gmra.mxu3 %v1674_v7  ;;  %v1185_v8 = vpop.f32.mrf.mxu1 }
 0x151   : > { %v1186_v10 = vadd.f32 %v1185_v8, %v783_v3 }
 0x152   : > { %v1495_v11 = vpop.f32.mrf.mxu2 }
 0x153   : > { %v1496_v12 = vadd.f32 %v2790_v18, %v1495_v11  ;;  %2273 = vmatmul.msk.f32.gmra.mxu1 %vm906_vm2, %v397_v9  ;;  %v1335_v13 = vadd.f32 %v2653_v6, %v1186_v10  ;;  %v403_v9 = vld [vmem:[%s2523_s24 + $0x168] sm:$0xff] }
 0x154   : > { %v786_v14 = vpop.f32.mrf.mxu0 }
 0x155   : > { %v1399_v16 = vmax.f32 %v1335_v13, 0.0  ;;  %v1675_v17 = vmax.f32 %v1496_v12, 0.0 }
 0x157   : > { %2210 = vmatmul.msk.f32.gmra.mxu0 %vm500_vm1, %v470_v15  ;;  %1545 = vmatmul.f32.gmra.mxu2 %v1399_v16  ;;  %v476_v15 = vld [vmem:[%s2507_s15 + $0x170] sm:$0xff] }
 0x158   : > { %1787 = vmatmul.f32.gmra.mxu3 %v1675_v17  ;;  %v1188_v19 = vpop.f32.mrf.mxu1 }
 0x159   : > { %v1189_v21 = vadd.f32 %v1188_v19, %v786_v14 }
 0x15a   : > { %v1498_v22 = vpop.f32.mrf.mxu2 }
 0x15b   : > { %v1499_v23 = vadd.f32 %v2790_v18, %v1498_v22  ;;  %2274 = vmatmul.msk.f32.gmra.mxu1 %vm906_vm2, %v398_v20  ;;  %v1336_v24 = vadd.f32 %v2653_v6, %v1189_v21  ;;  %v404_v20 = vld [vmem:[%s2523_s24 + $0x170] sm:$0xff] }
 0x15c   : > { %v789_v25 = vpop.f32.mrf.mxu0 }
 0x15d   : > { %v1400_v27 = vmax.f32 %v1336_v24, 0.0  ;;  %v1676_v28 = vmax.f32 %v1499_v23, 0.0 }
 0x15f   : > { %2211 = vmatmul.msk.f32.gmra.mxu0 %vm500_vm1, %v471_v26  ;;  %1548 = vmatmul.f32.gmra.mxu2 %v1400_v27  ;;  %v477_v26 = vld [vmem:[%s2507_s15 + $0x178] sm:$0xff] }
 0x160   : > { %1790 = vmatmul.f32.gmra.mxu3 %v1676_v28  ;;  %v1191_v29 = vpop.f32.mrf.mxu1 }
 0x161   : > { %v1192_v31 = vadd.f32 %v1191_v29, %v789_v25 }
 0x162   : > { %v1501_v32 = vpop.f32.mrf.mxu2 }
 0x163   : > { %v1337_v33 = vadd.f32 %v2653_v6, %v1192_v31  ;;  %v1502_v34 = vadd.f32 %v2790_v18, %v1501_v32  ;;  %2275 = vmatmul.msk.f32.gmra.mxu1 %vm906_vm2, %v399_v30  ;;  %v405_v30 = vld [vmem:[%s2523_s24 + $0x178] sm:$0xff] }
 0x164   : > { %v792_v35 = vpop.f32.mrf.mxu0 }
 0x165   : > { %v1401_v37 = vmax.f32 %v1337_v33, 0.0  ;;  %v1677_v38 = vmax.f32 %v1502_v34, 0.0 }
 0x167   : > { %2212 = vmatmul.msk.f32.gmra.mxu0 %vm500_vm1, %v472_v36  ;;  %1551 = vmatmul.f32.gmra.mxu2 %v1401_v37  ;;  %v478_v36 = vld [vmem:[%s2507_s15 + $0x180] sm:$0xff] }
 0x168   : > { %1793 = vmatmul.f32.gmra.mxu3 %v1677_v38  ;;  %v1194_v39 = vpop.f32.mrf.mxu1 }
 0x169   : > { %v1195_v41 = vadd.f32 %v1194_v39, %v792_v35 }
 0x16a   : > { %v1504_v42 = vpop.f32.mrf.mxu2 }
 0x16b   : > { %v1338_v43 = vadd.f32 %v2653_v6, %v1195_v41  ;;  %v1505_v44 = vadd.f32 %v2790_v18, %v1504_v42  ;;  %2276 = vmatmul.msk.f32.gmra.mxu1 %vm906_vm2, %v400_v40  ;;  %v406_v40 = vld [vmem:[%s2523_s24 + $0x180] sm:$0xff] }
 0x16c   : > { %v795_v45 = vpop.f32.mrf.mxu0 }
 0x16d   : > { %v1402_v47 = vmax.f32 %v1338_v43, 0.0  ;;  %v1678_v48 = vmax.f32 %v1505_v44, 0.0 }
 0x16f   : > { %2213 = vmatmul.msk.f32.gmra.mxu0 %vm500_vm1, %v473_v46  ;;  %1554 = vmatmul.f32.gmra.mxu2 %v1402_v47  ;;  %v479_v46 = vld [vmem:[%s2507_s15 + $0x188] sm:$0xff] }
 0x170   : > { %1796 = vmatmul.f32.gmra.mxu3 %v1678_v48  ;;  %v1197_v49 = vpop.f32.mrf.mxu1 }
 0x171   : > { %v1198_v51 = vadd.f32 %v1197_v49, %v795_v45 }
 0x172   : > { %v1507_v52 = vpop.f32.mrf.mxu2 }
 0x173   : > { %v1339_v53 = vadd.f32 %v2653_v6, %v1198_v51  ;;  %v1508_v54 = vadd.f32 %v2790_v18, %v1507_v52  ;;  %2277 = vmatmul.msk.f32.gmra.mxu1 %vm906_vm2, %v401_v50  ;;  %v407_v50 = vld [vmem:[%s2523_s24 + $0x188] sm:$0xff] }
 0x174   : > { %v798_v55 = vpop.f32.mrf.mxu0 }
 0x175   : > { %v1403_v57 = vmax.f32 %v1339_v53, 0.0  ;;  %v1679_v58 = vmax.f32 %v1508_v54, 0.0 }
 0x177   : > { %2214 = vmatmul.msk.f32.gmra.mxu0 %vm500_vm1, %v474_v56  ;;  %1557 = vmatmul.f32.gmra.mxu2 %v1403_v57  ;;  %v480_v56 = vld [vmem:[%s2507_s15 + $0x190] sm:$0xff] }
 0x178   : > { %1799 = vmatmul.f32.gmra.mxu3 %v1679_v58  ;;  %v1200_v59 = vpop.f32.mrf.mxu1 }
 0x179   : > { %v1201_v61 = vadd.f32 %v1200_v59, %v798_v55 }
 0x17a   : > { %v1510_v63 = vpop.f32.mrf.mxu2 }
 0x17b   : > { %v1340_v1 = vadd.f32 %v2653_v6, %v1201_v61  ;;  %v1511_v2 = vadd.f32 %v2790_v18, %v1510_v63  ;;  %2278 = vmatmul.msk.f32.gmra.mxu1 %vm906_vm2, %v402_v60  ;;  %v408_v60 = vld [vmem:[%s2523_s24 + $0x190] sm:$0xff] }
 0x17c   : > { %v801_v3 = vpop.f32.mrf.mxu0 }
 0x17d   : > { %v1404_v5 = vmax.f32 %v1340_v1, 0.0  ;;  %v1680_v7 = vmax.f32 %v1511_v2, 0.0 }
 0x17f   : > { %2215 = vmatmul.msk.f32.gmra.mxu0 %vm500_vm1, %v475_v4  ;;  %1560 = vmatmul.f32.gmra.mxu2 %v1404_v5  ;;  %v481_v4 = vld [vmem:[%s2507_s15 + $0x198] sm:$0xff] }
 0x180   : > { %1802 = vmatmul.f32.gmra.mxu3 %v1680_v7  ;;  %v1203_v8 = vpop.f32.mrf.mxu1 }
 0x181   : > { %v1204_v10 = vadd.f32 %v1203_v8, %v801_v3 }
 0x182   : > { %v1513_v11 = vpop.f32.mrf.mxu2 }
 0x183   : > { %v1341_v12 = vadd.f32 %v2653_v6, %v1204_v10  ;;  %v1514_v13 = vadd.f32 %v2790_v18, %v1513_v11  ;;  %2279 = vmatmul.msk.f32.gmra.mxu1 %vm906_vm2, %v403_v9  ;;  %v2897_v9 = vld [vmem:[%s3331_s8] ss:$0 sm:$0xff]  ;;  %v409_v10 = vld [vmem:[%s2523_s24 + $0x198] sm:$0xff] }
 0x184   : > { %v804_v14 = vpop.f32.mrf.mxu0 }
 0x185   : > { %v1405_v16 = vmax.f32 %v1341_v12, 0.0  ;;  %v1681_v17 = vmax.f32 %v1514_v13, 0.0 }
 0x187   : > { %2216 = vmatmul.msk.f32.gmra.mxu0 %vm500_vm1, %v476_v15  ;;  %1563 = vmatmul.f32.gmra.mxu2 %v1405_v16 }
 0x188   : > { %1805 = vmatmul.f32.gmra.mxu3 %v1681_v17  ;;  %v1206_v19 = vpop.f32.mrf.mxu1 }
 0x189   : > { %v1207_v21 = vadd.f32 %v1206_v19, %v804_v14  ;;  %v482_v19 = vld [vmem:[%s2507_s15 + $0x1a0] sm:$0xff] }
 0x18a   : > { %v1516_v22 = vpop.f32.mrf.mxu2 }
 0x18b   : > { %v1342_v23 = vadd.f32 %v2653_v6, %v1207_v21  ;;  %v1517_v24 = vadd.f32 %v2790_v18, %v1516_v22  ;;  %2280 = vmatmul.msk.f32.gmra.mxu1 %vm906_vm2, %v404_v20  ;;  %v2343_v22 = vld [vmem:[%s2523_s24 + $0x8] sm:$0xff] }
 0x18c   : > { %v807_v25 = vpop.f32.mrf.mxu0 }
 0x18d   : > { %v1406_v27 = vmax.f32 %v1342_v23, 0.0  ;;  %v1682_v28 = vmax.f32 %v1517_v24, 0.0 }
 0x18f   : > { %2217 = vmatmul.msk.f32.gmra.mxu0 %vm500_vm1, %v477_v26  ;;  %1566 = vmatmul.f32.gmra.mxu2 %v1406_v27 }
 0x190   : > { %1808 = vmatmul.f32.gmra.mxu3 %v1682_v28  ;;  %v1209_v29 = vpop.f32.mrf.mxu1 }
 0x191   : > { %v1210_v31 = vadd.f32 %v1209_v29, %v807_v25  ;;  %v410_v25 = vld [vmem:[%s2523_s24 + $0x1a0] sm:$0xff] }
 0x192   : > { %v1519_v32 = vpop.f32.mrf.mxu2 }
 0x193   : > { %v1343_v33 = vadd.f32 %v2653_v6, %v1210_v31  ;;  %v1520_v34 = vadd.f32 %v2790_v18, %v1519_v32  ;;  %2281 = vmatmul.msk.f32.gmra.mxu1 %vm906_vm2, %v405_v30 }
 0x194   : > { %v810_v35 = vpop.f32.mrf.mxu0 }
 0x195   : > { %v1407_v37 = vmax.f32 %v1343_v33, 0.0  ;;  %v1683_v38 = vmax.f32 %v1520_v34, 0.0  ;;  %v483_v33 = vld [vmem:[%s2507_s15 + $0x1a8] sm:$0xff] }
 0x197   : > { %2218 = vmatmul.msk.f32.gmra.mxu0 %vm500_vm1, %v478_v36  ;;  %1569 = vmatmul.f32.gmra.mxu2 %v1407_v37  ;;  %v2344_v36 = vld [vmem:[%s2523_s24 + $0x10] sm:$0xff] }
 0x198   : > { %1811 = vmatmul.f32.gmra.mxu3 %v1683_v38  ;;  %v1212_v39 = vpop.f32.mrf.mxu1 }
 0x199   : > { %v1213_v41 = vadd.f32 %v1212_v39, %v810_v35  ;;  %v411_v39 = vld [vmem:[%s2523_s24 + $0x1a8] sm:$0xff] }
 0x19a   : > { %v1522_v42 = vpop.f32.mrf.mxu2 }
 0x19b   : > { %v1344_v43 = vadd.f32 %v2653_v6, %v1213_v41  ;;  %v1523_v44 = vadd.f32 %v2790_v18, %v1522_v42  ;;  %2282 = vmatmul.msk.f32.gmra.mxu1 %vm906_vm2, %v406_v40 }
 0x19c   : > { %v813_v45 = vpop.f32.mrf.mxu0 }
 0x19d   : > { %v1408_v47 = vmax.f32 %v1344_v43, 0.0  ;;  %v1684_v48 = vmax.f32 %v1523_v44, 0.0 }
 0x19f   : > { %2219 = vmatmul.msk.f32.gmra.mxu0 %vm500_vm1, %v479_v46  ;;  %1572 = vmatmul.f32.gmra.mxu2 %v1408_v47  ;;  %v484_v47 = vld [vmem:[%s2507_s15 + $0x1b0] sm:$0xff] }
 0x1a0   : > { %1814 = vmatmul.f32.gmra.mxu3 %v1684_v48  ;;  %v1215_v49 = vpop.f32.mrf.mxu1 }
 0x1a1   : > { %v1216_v51 = vadd.f32 %v1215_v49, %v813_v45 }
 0x1a2   : > { %v1525_v52 = vpop.f32.mrf.mxu2 }
 0x1a3   : > { %v1345_v53 = vadd.f32 %v2653_v6, %v1216_v51  ;;  %v1526_v54 = vadd.f32 %v2790_v18, %v1525_v52  ;;  %2283 = vmatmul.msk.f32.gmra.mxu1 %vm906_vm2, %v407_v50  ;;  %v2345_v50 = vld [vmem:[%s2523_s24 + $0x18] sm:$0xff]  ;;  %v412_v52 = vld [vmem:[%s2523_s24 + $0x1b0] sm:$0xff] }
 0x1a4   : > { %v816_v55 = vpop.f32.mrf.mxu0 }
 0x1a5   : > { %v1409_v57 = vmax.f32 %v1345_v53, 0.0  ;;  %v1685_v58 = vmax.f32 %v1526_v54, 0.0 }
 0x1a7   : > { %2220 = vmatmul.msk.f32.gmra.mxu0 %vm500_vm1, %v480_v56  ;;  %1575 = vmatmul.f32.gmra.mxu2 %v1409_v57 }
 0x1a8   : > { %1817 = vmatmul.f32.gmra.mxu3 %v1685_v58  ;;  %v1218_v59 = vpop.f32.mrf.mxu1 }
 0x1a9   : > { %v1219_v61 = vadd.f32 %v1218_v59, %v816_v55  ;;  %v2939_v55 = vld [vmem:[%s3327_s4] ss:$0 sm:$0xff] }
 0x1aa   : > { %v1528_v63 = vpop.f32.mrf.mxu2 }
 0x1ab   : > { %v1346_v1 = vadd.f32 %v2653_v6, %v1219_v61  ;;  %v1529_v2 = vadd.f32 %v2790_v18, %v1528_v63  ;;  %2284 = vmatmul.msk.f32.gmra.mxu1 %vm906_vm2, %v408_v60  ;;  %v485_v61 = vld [vmem:[%s2507_s15 + $0x1b8] sm:$0xff] }
 0x1ac   : > { %v819_v3 = vpop.f32.mrf.mxu0 }
 0x1ad   : > { %v1410_v5 = vmax.f32 %v1346_v1, 0.0  ;;  %v1686_v7 = vmax.f32 %v1529_v2, 0.0  ;;  %v2347_v2 = vld [vmem:[%s2523_s24 + $0x20] sm:$0xff] }
 0x1af   : > { %2221 = vmatmul.msk.f32.gmra.mxu0 %vm500_vm1, %v481_v4  ;;  %1578 = vmatmul.f32.gmra.mxu2 %v1410_v5  ;;  %v413_v5 = vld [vmem:[%s2523_s24 + $0x1b8] sm:$0xff] }
 0x1b0   : > { %1820 = vmatmul.f32.gmra.mxu3 %v1686_v7  ;;  %v1221_v8 = vpop.f32.mrf.mxu1 }
 0x1b1   : > { %v1222_v11 = vadd.f32 %v1221_v8, %v819_v3 }
 0x1b2   : > { %v1531_v12 = vpop.f32.mrf.mxu2 }
 0x1b3   : > { %v1347_v13 = vadd.f32 %v2653_v6, %v1222_v11  ;;  %v1532_v14 = vadd.f32 %v2790_v18, %v1531_v12  ;;  %v1773_v15 = vpop.f32.mrf.mxu3  ;;  %2285 = vmatmul.msk.f32.gmra.mxu1 %vm906_vm2, %v409_v10 }
 0x1b4   : > { %v1774_v16 = vadd.f32 %v2897_v9, %v1773_v15  ;;  %v822_v17 = vpop.f32.mrf.mxu0  ;;  %v486_v15 = vld [vmem:[%s2507_s15 + $0x1c0] sm:$0xff] }
 0x1b5   : > { %v1411_v20 = vmax.f32 %v1347_v13, 0.0  ;;  %v1687_v21 = vmax.f32 %v1532_v14, 0.0 }
 0x1b6   : > { %v1963_v23 = vadd.f32 %v2343_v22, %v1774_v16  ;;  %v414_v22 = vld [vmem:[%s2523_s24 + $0x1c0] sm:$0xff] }
 0x1b7   : > { %2222 = vmatmul.msk.f32.gmra.mxu0 %vm500_vm1, %v482_v19  ;;  %1581 = vmatmul.f32.gmra.mxu2 %v1411_v20  ;;  %v2348_v19 = vld [vmem:[%s2523_s24 + $0x28] sm:$0xff] }
 0x1b8   : > { %2027 = vst.msk [vmem:[%s2909_s12 + $0x8] sm:$0xff] %vm906_vm2, %v1963_v23  ;;  %1823 = vmatmul.f32.gmra.mxu3 %v1687_v21  ;;  %v1224_v24 = vpop.f32.mrf.mxu1 }
 0x1b9   : > { %v1225_v26 = vadd.f32 %v1224_v24, %v822_v17 }
 0x1ba   : > { %v1534_v27 = vpop.f32.mrf.mxu2 }
 0x1bb   : > { %v1348_v28 = vadd.f32 %v2653_v6, %v1225_v26  ;;  %v1535_v29 = vadd.f32 %v2790_v18, %v1534_v27  ;;  %v1776_v30 = vpop.f32.mrf.mxu3  ;;  %2286 = vmatmul.msk.f32.gmra.mxu1 %vm906_vm2, %v410_v25 }
 0x1bc   : > { %v1777_v31 = vadd.f32 %v2897_v9, %v1776_v30  ;;  %v825_v32 = vpop.f32.mrf.mxu0  ;;  %v487_v30 = vld [vmem:[%s2507_s15 + $0x1c8] sm:$0xff] }
 0x1bd   : > { %v1412_v34 = vmax.f32 %v1348_v28, 0.0  ;;  %v1688_v35 = vmax.f32 %v1535_v29, 0.0 }
 0x1be   : > { %v1964_v37 = vadd.f32 %v2344_v36, %v1777_v31  ;;  %v415_v36 = vld [vmem:[%s2523_s24 + $0x1c8] sm:$0xff] }
 0x1bf   : > { %2223 = vmatmul.msk.f32.gmra.mxu0 %vm500_vm1, %v483_v33  ;;  %1584 = vmatmul.f32.gmra.mxu2 %v1412_v34  ;;  %v2349_v33 = vld [vmem:[%s2523_s24 + $0x30] sm:$0xff] }
 0x1c0   : > { %2028 = vst.msk [vmem:[%s2909_s12 + $0x10] sm:$0xff] %vm906_vm2, %v1964_v37  ;;  %1826 = vmatmul.f32.gmra.mxu3 %v1688_v35  ;;  %v1227_v38 = vpop.f32.mrf.mxu1 }
 0x1c1   : > { %v1228_v40 = vadd.f32 %v1227_v38, %v825_v32 }
 0x1c2   : > { %v1537_v41 = vpop.f32.mrf.mxu2 }
 0x1c3   : > { %v1349_v42 = vadd.f32 %v2653_v6, %v1228_v40  ;;  %v1538_v43 = vadd.f32 %v2790_v18, %v1537_v41  ;;  %v1779_v44 = vpop.f32.mrf.mxu3  ;;  %2287 = vmatmul.msk.f32.gmra.mxu1 %vm906_vm2, %v411_v39 }
 0x1c4   : > { %v1780_v45 = vadd.f32 %v2897_v9, %v1779_v44  ;;  %v828_v46 = vpop.f32.mrf.mxu0  ;;  %v488_v44 = vld [vmem:[%s2507_s15 + $0x1d0] sm:$0xff] }
 0x1c5   : > { %v1413_v48 = vmax.f32 %v1349_v42, 0.0  ;;  %v1689_v49 = vmax.f32 %v1538_v43, 0.0 }
 0x1c6   : > { %v1965_v51 = vadd.f32 %v2345_v50, %v1780_v45  ;;  %v416_v50 = vld [vmem:[%s2523_s24 + $0x1d0] sm:$0xff] }
 0x1c7   : > { %2224 = vmatmul.msk.f32.gmra.mxu0 %vm500_vm1, %v484_v47  ;;  %1587 = vmatmul.f32.gmra.mxu2 %v1413_v48  ;;  %v2350_v47 = vld [vmem:[%s2523_s24 + $0x38] sm:$0xff] }
 0x1c8   : > { %2029 = vst.msk [vmem:[%s2909_s12 + $0x18] sm:$0xff] %vm906_vm2, %v1965_v51  ;;  %1829 = vmatmul.f32.gmra.mxu3 %v1689_v49  ;;  %v1230_v6 = vpop.f32.mrf.mxu1 }
 0x1c9   : > { %v1231_v53 = vadd.f32 %v1230_v6, %v828_v46 }
 0x1ca   : > { %v1540_v54 = vpop.f32.mrf.mxu2 }
 0x1cb   : > { %v1350_v56 = vadd.f32 %v2939_v55, %v1231_v53  ;;  %v1541_v57 = vadd.f32 %v2790_v18, %v1540_v54  ;;  %v1782_v58 = vpop.f32.mrf.mxu3  ;;  %2288 = vmatmul.msk.f32.gmra.mxu1 %vm906_vm2, %v412_v52 }
 0x1cc   : > { %v1783_v59 = vadd.f32 %v2897_v9, %v1782_v58  ;;  %v831_v60 = vpop.f32.mrf.mxu0  ;;  %v489_v58 = vld [vmem:[%s2507_s15 + $0x1d8] sm:$0xff] }
 0x1cd   : > { %v1414_v63 = vmax.f32 %v1350_v56, 0.0  ;;  %v1690_v1 = vmax.f32 %v1541_v57, 0.0 }
 0x1ce   : > { %v1966_v3 = vadd.f32 %v2347_v2, %v1783_v59  ;;  %v2991_v2 = vld [vmem:[%s2523_s24 + $0x1d8] sm:$0xff] }
 0x1cf   : > { %2225 = vmatmul.msk.f32.gmra.mxu0 %vm500_vm1, %v485_v61  ;;  %1590 = vmatmul.f32.gmra.mxu2 %v1414_v63  ;;  %v2351_v61 = vld [vmem:[%s2523_s24 + $0x40] sm:$0xff] }
 0x1d0   : > { %2030 = vst.msk [vmem:[%s2909_s12 + $0x20] sm:$0xff] %vm906_vm2, %v1966_v3  ;;  %1832 = vmatmul.f32.gmra.mxu3 %v1690_v1  ;;  %v1233_v4 = vpop.f32.mrf.mxu1 }
 0x1d1   : > { %v1234_v7 = vadd.f32 %v1233_v4, %v831_v60 }
 0x1d2   : > { %v1543_v8 = vpop.f32.mrf.mxu2 }
 0x1d3   : > { %v1351_v10 = vadd.f32 %v2939_v55, %v1234_v7  ;;  %v1544_v11 = vadd.f32 %v2790_v18, %v1543_v8  ;;  %v1785_v12 = vpop.f32.mrf.mxu3  ;;  %2289 = vmatmul.msk.f32.gmra.mxu1 %vm906_vm2, %v413_v5 }
 0x1d4   : > { %v1786_v13 = vadd.f32 %v2897_v9, %v1785_v12  ;;  %v834_v14 = vpop.f32.mrf.mxu0  ;;  %v490_v12 = vld [vmem:[%s2507_s15 + $0x1e0] sm:$0xff] }
 0x1d5   : > { %v1415_v16 = vmax.f32 %v1351_v10, 0.0  ;;  %v1691_v17 = vmax.f32 %v1544_v11, 0.0 }
 0x1d6   : > { %v1967_v20 = vadd.f32 %v2348_v19, %v1786_v13  ;;  %v3004_v19 = vld [vmem:[%s2523_s24 + $0x1e0] sm:$0xff] }
 0x1d7   : > { %2226 = vmatmul.msk.f32.gmra.mxu0 %vm500_vm1, %v486_v15  ;;  %1593 = vmatmul.f32.gmra.mxu2 %v1415_v16  ;;  %v2352_v15 = vld [vmem:[%s2523_s24 + $0x48] sm:$0xff] }
 0x1d8   : > { %2031 = vst.msk [vmem:[%s2909_s12 + $0x28] sm:$0xff] %vm906_vm2, %v1967_v20  ;;  %1835 = vmatmul.f32.gmra.mxu3 %v1691_v17  ;;  %v1236_v21 = vpop.f32.mrf.mxu1 }
 0x1d9   : > { %v1237_v23 = vadd.f32 %v1236_v21, %v834_v14 }
 0x1da   : > { %v1546_v24 = vpop.f32.mrf.mxu2 }
 0x1db   : > { %v1352_v25 = vadd.f32 %v2939_v55, %v1237_v23  ;;  %v1547_v26 = vadd.f32 %v2790_v18, %v1546_v24  ;;  %v1788_v27 = vpop.f32.mrf.mxu3  ;;  %2290 = vmatmul.msk.f32.gmra.mxu1 %vm906_vm2, %v414_v22 }
 0x1dc   : > { %v1789_v28 = vadd.f32 %v2897_v9, %v1788_v27  ;;  %v837_v29 = vpop.f32.mrf.mxu0  ;;  %v491_v27 = vld [vmem:[%s2507_s15 + $0x1e8] sm:$0xff] }
 0x1dd   : > { %v1416_v31 = vmax.f32 %v1352_v25, 0.0  ;;  %v1692_v32 = vmax.f32 %v1547_v26, 0.0 }
 0x1de   : > { %v1968_v34 = vadd.f32 %v2349_v33, %v1789_v28  ;;  %v3017_v33 = vld [vmem:[%s2523_s24 + $0x1e8] sm:$0xff] }
 0x1df   : > { %2227 = vmatmul.msk.f32.gmra.mxu0 %vm500_vm1, %v487_v30  ;;  %1596 = vmatmul.f32.gmra.mxu2 %v1416_v31  ;;  %v2353_v30 = vld [vmem:[%s2523_s24 + $0x50] sm:$0xff] }
 0x1e0   : > { %2032 = vst.msk [vmem:[%s2909_s12 + $0x30] sm:$0xff] %vm906_vm2, %v1968_v34  ;;  %1838 = vmatmul.f32.gmra.mxu3 %v1692_v32  ;;  %v1239_v35 = vpop.f32.mrf.mxu1 }
 0x1e1   : > { %v1240_v37 = vadd.f32 %v1239_v35, %v837_v29 }
 0x1e2   : > { %v1549_v38 = vpop.f32.mrf.mxu2 }
 0x1e3   : > { %v1353_v39 = vadd.f32 %v2939_v55, %v1240_v37  ;;  %v1550_v40 = vadd.f32 %v2790_v18, %v1549_v38  ;;  %v1791_v41 = vpop.f32.mrf.mxu3  ;;  %2291 = vmatmul.msk.f32.gmra.mxu1 %vm906_vm2, %v415_v36 }
 0x1e4   : > { %v1792_v42 = vadd.f32 %v2897_v9, %v1791_v41  ;;  %v840_v43 = vpop.f32.mrf.mxu0  ;;  %v492_v41 = vld [vmem:[%s2507_s15 + $0x1f0] sm:$0xff] }
 0x1e5   : > { %v1417_v45 = vmax.f32 %v1353_v39, 0.0  ;;  %v1693_v46 = vmax.f32 %v1550_v40, 0.0 }
 0x1e6   : > { %v1969_v48 = vadd.f32 %v2350_v47, %v1792_v42  ;;  %v3030_v47 = vld [vmem:[%s2523_s24 + $0x1f0] sm:$0xff] }
 0x1e7   : > { %2228 = vmatmul.msk.f32.gmra.mxu0 %vm500_vm1, %v488_v44  ;;  %1599 = vmatmul.f32.gmra.mxu2 %v1417_v45  ;;  %v2354_v44 = vld [vmem:[%s2523_s24 + $0x58] sm:$0xff] }
 0x1e8   : > { %2033 = vst.msk [vmem:[%s2909_s12 + $0x38] sm:$0xff] %vm906_vm2, %v1969_v48  ;;  %1841 = vmatmul.f32.gmra.mxu3 %v1693_v46  ;;  %v1242_v49 = vpop.f32.mrf.mxu1 }
 0x1e9   : > { %v1243_v51 = vadd.f32 %v1242_v49, %v840_v43 }
 0x1ea   : > { %v1552_v6 = vpop.f32.mrf.mxu2 }
 0x1eb   : > { %v1354_v52 = vadd.f32 %v2939_v55, %v1243_v51  ;;  %v1553_v53 = vadd.f32 %v2790_v18, %v1552_v6  ;;  %v1794_v54 = vpop.f32.mrf.mxu3  ;;  %2292 = vmatmul.msk.f32.gmra.mxu1 %vm906_vm2, %v416_v50 }
 0x1ec   : > { %v1795_v56 = vadd.f32 %v2897_v9, %v1794_v54  ;;  %v843_v57 = vpop.f32.mrf.mxu0  ;;  %v493_v54 = vld [vmem:[%s2507_s15 + $0x1f8] sm:$0xff] }
 0x1ed   : > { %v1418_v59 = vmax.f32 %v1354_v52, 0.0  ;;  %v1694_v60 = vmax.f32 %v1553_v53, 0.0 }
 0x1ee   : > { %v1970_v63 = vadd.f32 %v2351_v61, %v1795_v56  ;;  %v1117_v56 = vadd.f32 %v2643_v0, %v2639_v62 }
 0x1ef   : > { %2229 = vmatmul.msk.f32.gmra.mxu0 %vm500_vm1, %v489_v58  ;;  %1602 = vmatmul.f32.gmra.mxu2 %v1418_v59  ;;  %v2355_v59 = vld [vmem:[%s2523_s24 + $0x60] sm:$0xff] }
 0x1f0   : > { %2034 = vst.msk [vmem:[%s2909_s12 + $0x40] sm:$0xff] %vm906_vm2, %v1970_v63  ;;  %1844 = vmatmul.f32.gmra.mxu3 %v1694_v60  ;;  %v1245_v1 = vpop.f32.mrf.mxu1  ;;  %v3045_v63 = vld [vmem:[%s2523_s24 + $0x1f8] sm:$0xff] }
 0x1f1   : > { %v1246_v3 = vadd.f32 %v1245_v1, %v843_v57  ;;  %v1312_v1 = vadd.f32 %v2939_v55, %v1117_v56 }
 0x1f2   : > { %v1555_v4 = vpop.f32.mrf.mxu2 }
 0x1f3   : > { %v1355_v5 = vadd.f32 %v2939_v55, %v1246_v3  ;;  %v1556_v7 = vadd.f32 %v2790_v18, %v1555_v4  ;;  %v1797_v8 = vpop.f32.mrf.mxu3  ;;  %2293 = vmatmul.msk.f32.gmra.mxu1 %vm906_vm2, %v2991_v2 }
 0x1f4   : > { %v1798_v10 = vadd.f32 %v2897_v9, %v1797_v8  ;;  %v846_v11 = vpop.f32.mrf.mxu0 }
 0x1f5   : > { %v1419_v13 = vmax.f32 %v1355_v5, 0.0  ;;  %v1695_v14 = vmax.f32 %v1556_v7, 0.0 }
 0x1f6   : > { %v1971_v16 = vadd.f32 %v2352_v15, %v1798_v10  ;;  %v1376_v10 = vmax.f32 %v1312_v1, 0.0 }
 0x1f7   : > { %2230 = vmatmul.msk.f32.gmra.mxu0 %vm500_vm1, %v490_v12  ;;  %1605 = vmatmul.f32.gmra.mxu2 %v1419_v13  ;;  %v2356_v13 = vld [vmem:[%s2523_s24 + $0x68] sm:$0xff] }
 0x1f8   : > { %2035 = vst.msk [vmem:[%s2909_s12 + $0x48] sm:$0xff] %vm906_vm2, %v1971_v16  ;;  %1847 = vmatmul.f32.gmra.mxu3 %v1695_v14  ;;  %v1248_v17 = vpop.f32.mrf.mxu1 }
 0x1f9   : > { %v1249_v20 = vadd.f32 %v1248_v17, %v846_v11 }
 0x1fa   : > { %v1558_v21 = vpop.f32.mrf.mxu2 }
 0x1fb   : > { %v1356_v22 = vadd.f32 %v2939_v55, %v1249_v20  ;;  %v1559_v23 = vadd.f32 %v2790_v18, %v1558_v21  ;;  %v1800_v24 = vpop.f32.mrf.mxu3  ;;  %2294 = vmatmul.msk.f32.gmra.mxu1 %vm906_vm2, %v3004_v19 }
 0x1fc   : > { %v1801_v25 = vadd.f32 %v2897_v9, %v1800_v24  ;;  %v849_v26 = vpop.f32.mrf.mxu0 }
 0x1fd   : > { %v1420_v28 = vmax.f32 %v1356_v22, 0.0  ;;  %v1696_v29 = vmax.f32 %v1559_v23, 0.0 }
 0x1fe   : > { %v1972_v31 = vadd.f32 %v2353_v30, %v1801_v25 }
 0x1ff   : > { %2231 = vmatmul.msk.f32.gmra.mxu0 %vm500_vm1, %v491_v27  ;;  %1608 = vmatmul.f32.gmra.mxu2 %v1420_v28  ;;  %v2357_v27 = vld [vmem:[%s2523_s24 + $0x70] sm:$0xff] }
 0x200   : > { %2036 = vst.msk [vmem:[%s2909_s12 + $0x50] sm:$0xff] %vm906_vm2, %v1972_v31  ;;  %1850 = vmatmul.f32.gmra.mxu3 %v1696_v29  ;;  %v1251_v32 = vpop.f32.mrf.mxu1 }
 0x201   : > { %v1252_v34 = vadd.f32 %v1251_v32, %v849_v26 }
 0x202   : > { %v1561_v35 = vpop.f32.mrf.mxu2 }
 0x203   : > { %v1357_v36 = vadd.f32 %v2939_v55, %v1252_v34  ;;  %v1562_v37 = vadd.f32 %v2790_v18, %v1561_v35  ;;  %v1803_v38 = vpop.f32.mrf.mxu3  ;;  %2295 = vmatmul.msk.f32.gmra.mxu1 %vm906_vm2, %v3017_v33 }
 0x204   : > { %v1804_v39 = vadd.f32 %v2897_v9, %v1803_v38  ;;  %v852_v40 = vpop.f32.mrf.mxu0 }
 0x205   : > { %v1421_v42 = vmax.f32 %v1357_v36, 0.0  ;;  %v1697_v43 = vmax.f32 %v1562_v37, 0.0 }
 0x206   : > { %v1973_v45 = vadd.f32 %v2354_v44, %v1804_v39 }
 0x207   : > { %2232 = vmatmul.msk.f32.gmra.mxu0 %vm500_vm1, %v492_v41  ;;  %1611 = vmatmul.f32.gmra.mxu2 %v1421_v42 }
 0x208   : > { %2037 = vst.msk [vmem:[%s2909_s12 + $0x58] sm:$0xff] %vm906_vm2, %v1973_v45  ;;  %1853 = vmatmul.f32.gmra.mxu3 %v1697_v43  ;;  %v1254_v46 = vpop.f32.mrf.mxu1 }
 0x209   : > { %v1255_v48 = vadd.f32 %v1254_v46, %v852_v40  ;;  %v2358_v40 = vld [vmem:[%s2523_s24 + $0x78] sm:$0xff] }
 0x20a   : > { %v1564_v49 = vpop.f32.mrf.mxu2 }
 0x20b   : > { %v1358_v50 = vadd.f32 %v2939_v55, %v1255_v48  ;;  %v1565_v51 = vadd.f32 %v2790_v18, %v1564_v49  ;;  %v1806_v6 = vpop.f32.mrf.mxu3  ;;  %2296 = vmatmul.msk.f32.gmra.mxu1 %vm906_vm2, %v3030_v47 }
 0x20c   : > { %v1807_v52 = vadd.f32 %v2897_v9, %v1806_v6  ;;  %v855_v53 = vpop.f32.mrf.mxu0 }
 0x20d   : > { %v1422_v57 = vmax.f32 %v1358_v50, 0.0  ;;  %v1698_v58 = vmax.f32 %v1565_v51, 0.0 }
 0x20e   : > { %v1974_v60 = vadd.f32 %v2355_v59, %v1807_v52  ;;  %v2359_v52 = vld [vmem:[%s2523_s24 + $0x80] sm:$0xff] }
 0x20f   : > { %2233 = vmatmul.msk.f32.gmra.mxu0 %vm500_vm1, %v493_v54  ;;  %1614 = vmatmul.f32.gmra.mxu2 %v1422_v57 }
 0x210   : > { %2038 = vst.msk [vmem:[%s2909_s12 + $0x60] sm:$0xff] %vm906_vm2, %v1974_v60  ;;  %1856 = vmatmul.f32.gmra.mxu3 %v1698_v58  ;;  %v1257_v61 = vpop.f32.mrf.mxu1 }
 0x211   : > { %v1258_v3 = vadd.f32 %v1257_v61, %v855_v53 }
 0x212   : > { %v1567_v4 = vpop.f32.mrf.mxu2 }
 0x213   : > { %v1359_v62 = vadd.f32 %v2939_v55, %v1258_v3  ;;  %v1568_v0 = vadd.f32 %v2790_v18, %v1567_v4  ;;  %v1809_v5 = vpop.f32.mrf.mxu3  ;;  %2297 = vmatmul.msk.f32.gmra.mxu1 %vm906_vm2, %v3045_v63 }
 0x214   : > { %v1810_v7 = vadd.f32 %v2897_v9, %v1809_v5  ;;  %v858_v8 = vpop.f32.mrf.mxu0 }
 0x215   : > { %v1423_v11 = vmax.f32 %v1359_v62, 0.0  ;;  %v1699_v12 = vmax.f32 %v1568_v0, 0.0  ;;  %v2361_v62 = vld [vmem:[%s2523_s24 + $0x88] sm:$0xff] }
 0x216   : > { %v1975_v14 = vadd.f32 %v2356_v13, %v1810_v7 }
 0x217   : > { %1476 = vmatmul.f32.vlgmr.msrb.gmra.mxu0 %v1376_v10  ;;  %1617 = vmatmul.f32.gmra.mxu2 %v1423_v11 }
 0x218   : > { %2039 = vst.msk [vmem:[%s2909_s12 + $0x68] sm:$0xff] %vm906_vm2, %v1975_v14  ;;  %1859 = vmatmul.f32.gmra.mxu3 %v1699_v12  ;;  %v1260_v15 = vpop.f32.mrf.mxu1 }
 0x219   : > { %v1261_v16 = vadd.f32 %v1260_v15, %v858_v8 }
 0x21a   : > { %v1570_v17 = vpop.f32.mrf.mxu2 }
 0x21b   : > { %v1360_v20 = vadd.f32 %v2939_v55, %v1261_v16  ;;  %v1571_v21 = vadd.f32 %v2790_v18, %v1570_v17  ;;  %v1812_v22 = vpop.f32.mrf.mxu3  ;;  %v2362_v17 = vld [vmem:[%s2523_s24 + $0x90] sm:$0xff] }
 0x21c   : > { %v1813_v23 = vadd.f32 %v2897_v9, %v1812_v22  ;;  %v861_v24 = vpop.f32.mrf.mxu0 }
 0x21d   : > { %v1424_v25 = vmax.f32 %v1360_v20, 0.0  ;;  %v1700_v26 = vmax.f32 %v1571_v21, 0.0 }
 0x21e   : > { %v1976_v28 = vadd.f32 %v2357_v27, %v1813_v23 }
 0x21f   : > { %1620 = vmatmul.f32.gmra.mxu2 %v1424_v25 }
 0x220   : > { %2040 = vst.msk [vmem:[%s2909_s12 + $0x70] sm:$0xff] %vm906_vm2, %v1976_v28  ;;  %1862 = vmatmul.f32.gmra.mxu3 %v1700_v26  ;;  %v1263_v29 = vpop.f32.mrf.mxu1 }
 0x221   : > { %v1264_v30 = vadd.f32 %v1263_v29, %v861_v24 }
 0x222   : > { %v1573_v31 = vpop.f32.mrf.mxu2 }
 0x223   : > { %v1361_v32 = vadd.f32 %v2939_v55, %v1264_v30  ;;  %v1574_v34 = vadd.f32 %v2790_v18, %v1573_v31  ;;  %v1815_v35 = vpop.f32.mrf.mxu3  ;;  %v2363_v31 = vld [vmem:[%s2523_s24 + $0x98] sm:$0xff] }
 0x224   : > { %v1816_v36 = vadd.f32 %v2897_v9, %v1815_v35  ;;  %v864_v37 = vpop.f32.mrf.mxu0 }
 0x225   : > { %v1425_v38 = vmax.f32 %v1361_v32, 0.0  ;;  %v1701_v39 = vmax.f32 %v1574_v34, 0.0 }
 0x226   : > { %v1977_v41 = vadd.f32 %v2358_v40, %v1816_v36 }
 0x227   : > { %1623 = vmatmul.f32.gmra.mxu2 %v1425_v38 }
 0x228   : > { %2041 = vst.msk [vmem:[%s2909_s12 + $0x78] sm:$0xff] %vm906_vm2, %v1977_v41  ;;  %1865 = vmatmul.f32.gmra.mxu3 %v1701_v39  ;;  %v1266_v42 = vpop.f32.mrf.mxu1 }
 0x229   : > { %v1267_v43 = vadd.f32 %v1266_v42, %v864_v37 }
 0x22a   : > { %v1576_v44 = vpop.f32.mrf.mxu2 }
 0x22b   : > { %v1362_v45 = vadd.f32 %v2939_v55, %v1267_v43  ;;  %v1577_v46 = vadd.f32 %v2790_v18, %v1576_v44  ;;  %v1818_v48 = vpop.f32.mrf.mxu3  ;;  %v3078_v18 = vld [vmem:[%s3329_s6] ss:$0 sm:$0xff] }
 0x22c   : > { %v1819_v49 = vadd.f32 %v2897_v9, %v1818_v48  ;;  %v867_v50 = vpop.f32.mrf.mxu0  ;;  %v2364_v44 = vld [vmem:[%s2523_s24 + $0xa0] sm:$0xff] }
 0x22d   : > { %v1426_v51 = vmax.f32 %v1362_v45, 0.0  ;;  %v1702_v6 = vmax.f32 %v1577_v46, 0.0 }
 0x22e   : > { %v1978_v53 = vadd.f32 %v2359_v52, %v1819_v49 }
 0x22f   : > { %1626 = vmatmul.f32.gmra.mxu2 %v1426_v51 }
 0x230   : > { %2042 = vst.msk [vmem:[%s2909_s12 + $0x80] sm:$0xff] %vm906_vm2, %v1978_v53  ;;  %1868 = vmatmul.f32.gmra.mxu3 %v1702_v6  ;;  %v1269_v54 = vpop.f32.mrf.mxu1 }
 0x231   : > { %v1270_v56 = vadd.f32 %v1269_v54, %v867_v50 }
 0x232   : > { %v1579_v57 = vpop.f32.mrf.mxu2 }
 0x233   : > { %v1363_v58 = vadd.f32 %v2939_v55, %v1270_v56  ;;  %v1580_v59 = vadd.f32 %v3078_v18, %v1579_v57  ;;  %v1821_v60 = vpop.f32.mrf.mxu3  ;;  %v2365_v57 = vld [vmem:[%s2523_s24 + $0xa8] sm:$0xff] }
 0x234   : > { %v1822_v61 = vadd.f32 %v2897_v9, %v1821_v60  ;;  %v870_v1 = vpop.f32.mrf.mxu0 }
 0x235   : > { %v1427_v3 = vmax.f32 %v1363_v58, 0.0  ;;  %v1703_v4 = vmax.f32 %v1580_v59, 0.0 }
 0x236   : > { %v1979_v0 = vadd.f32 %v2361_v62, %v1822_v61 }
 0x237   : > { %1629 = vmatmul.f32.gmra.mxu2 %v1427_v3 }
 0x238   : > { %2043 = vst.msk [vmem:[%s2909_s12 + $0x88] sm:$0xff] %vm906_vm2, %v1979_v0  ;;  %1871 = vmatmul.f32.gmra.mxu3 %v1703_v4  ;;  %v1272_v5 = vpop.f32.mrf.mxu1 }
 0x239   : > { %v1273_v7 = vadd.f32 %v1272_v5, %v870_v1 }
 0x23a   : > { %v1582_v8 = vpop.f32.mrf.mxu2 }
 0x23b   : > { %v1364_v10 = vadd.f32 %v2939_v55, %v1273_v7  ;;  %v1583_v11 = vadd.f32 %v3078_v18, %v1582_v8  ;;  %v1824_v12 = vpop.f32.mrf.mxu3  ;;  %v2366_v8 = vld [vmem:[%s2523_s24 + $0xb0] sm:$0xff] }
 0x23c   : > { %v1825_v13 = vadd.f32 %v2897_v9, %v1824_v12  ;;  %v873_v14 = vpop.f32.mrf.mxu0 }
 0x23d   : > { %v1428_v15 = vmax.f32 %v1364_v10, 0.0  ;;  %v1704_v16 = vmax.f32 %v1583_v11, 0.0 }
 0x23e   : > { %v1980_v20 = vadd.f32 %v2362_v17, %v1825_v13 }
 0x23f   : > { %1632 = vmatmul.f32.gmra.mxu2 %v1428_v15 }
 0x240   : > { %2044 = vst.msk [vmem:[%s2909_s12 + $0x90] sm:$0xff] %vm906_vm2, %v1980_v20  ;;  %1874 = vmatmul.f32.gmra.mxu3 %v1704_v16  ;;  %v1275_v21 = vpop.f32.mrf.mxu1 }
 0x241   : > { %v1276_v22 = vadd.f32 %v1275_v21, %v873_v14 }
 0x242   : > { %v1585_v23 = vpop.f32.mrf.mxu2 }
 0x243   : > { %v1365_v24 = vadd.f32 %v2939_v55, %v1276_v22  ;;  %v1586_v25 = vadd.f32 %v3078_v18, %v1585_v23  ;;  %v1827_v26 = vpop.f32.mrf.mxu3  ;;  %v2367_v23 = vld [vmem:[%s2523_s24 + $0xb8] sm:$0xff] }
 0x244   : > { %v1828_v27 = vadd.f32 %v2897_v9, %v1827_v26  ;;  %v876_v28 = vpop.f32.mrf.mxu0 }
 0x245   : > { %v1429_v29 = vmax.f32 %v1365_v24, 0.0  ;;  %v1705_v30 = vmax.f32 %v1586_v25, 0.0 }
 0x246   : > { %v1981_v32 = vadd.f32 %v2363_v31, %v1828_v27 }
 0x247   : > { %1635 = vmatmul.f32.gmra.mxu2 %v1429_v29 }
 0x248   : > { %2045 = vst.msk [vmem:[%s2909_s12 + $0x98] sm:$0xff] %vm906_vm2, %v1981_v32  ;;  %1877 = vmatmul.f32.gmra.mxu3 %v1705_v30  ;;  %v1278_v34 = vpop.f32.mrf.mxu1 }
 0x249   : > { %v1279_v35 = vadd.f32 %v1278_v34, %v876_v28 }
 0x24a   : > { %v1588_v36 = vpop.f32.mrf.mxu2 }
 0x24b   : > { %v1366_v37 = vadd.f32 %v2939_v55, %v1279_v35  ;;  %v1589_v38 = vadd.f32 %v3078_v18, %v1588_v36  ;;  %v1830_v39 = vpop.f32.mrf.mxu3  ;;  %v2368_v36 = vld [vmem:[%s2523_s24 + $0xc0] sm:$0xff] }
 0x24c   : > { %v1831_v40 = vadd.f32 %v2897_v9, %v1830_v39  ;;  %v879_v41 = vpop.f32.mrf.mxu0 }
 0x24d   : > { %v1430_v42 = vmax.f32 %v1366_v37, 0.0  ;;  %v1706_v43 = vmax.f32 %v1589_v38, 0.0 }
 0x24e   : > { %v1982_v45 = vadd.f32 %v2364_v44, %v1831_v40 }
 0x24f   : > { %1638 = vmatmul.f32.gmra.mxu2 %v1430_v42 }
 0x250   : > { %2046 = vst.msk [vmem:[%s2909_s12 + $0xa0] sm:$0xff] %vm906_vm2, %v1982_v45  ;;  %1880 = vmatmul.f32.gmra.mxu3 %v1706_v43  ;;  %v1281_v46 = vpop.f32.mrf.mxu1 }
 0x251   : > { %v1282_v48 = vadd.f32 %v1281_v46, %v879_v41 }
 0x252   : > { %v1591_v49 = vpop.f32.mrf.mxu2 }
 0x253   : > { %v1367_v50 = vadd.f32 %v2939_v55, %v1282_v48  ;;  %v1592_v51 = vadd.f32 %v3078_v18, %v1591_v49  ;;  %v1833_v6 = vpop.f32.mrf.mxu3  ;;  %v2369_v49 = vld [vmem:[%s2523_s24 + $0xc8] sm:$0xff] }
 0x254   : > { %v1834_v52 = vadd.f32 %v2897_v9, %v1833_v6  ;;  %v882_v53 = vpop.f32.mrf.mxu0 }
 0x255   : > { %v1431_v54 = vmax.f32 %v1367_v50, 0.0  ;;  %v1707_v56 = vmax.f32 %v1592_v51, 0.0 }
 0x256   : > { %v1983_v58 = vadd.f32 %v2365_v57, %v1834_v52 }
 0x257   : > { %1641 = vmatmul.f32.gmra.mxu2 %v1431_v54 }
 0x258   : > { %2047 = vst.msk [vmem:[%s2909_s12 + $0xa8] sm:$0xff] %vm906_vm2, %v1983_v58  ;;  %1883 = vmatmul.f32.gmra.mxu3 %v1707_v56  ;;  %v1284_v59 = vpop.f32.mrf.mxu1 }
 0x259   : > { %v1285_v60 = vadd.f32 %v1284_v59, %v882_v53 }
 0x25a   : > { %v1594_v61 = vpop.f32.mrf.mxu2 }
 0x25b   : > { %v1368_v1 = vadd.f32 %v2939_v55, %v1285_v60  ;;  %v1595_v3 = vadd.f32 %v3078_v18, %v1594_v61  ;;  %v1836_v4 = vpop.f32.mrf.mxu3  ;;  %v2370_v61 = vld [vmem:[%s2523_s24 + $0xd0] sm:$0xff] }
 0x25c   : > { %v1837_v62 = vadd.f32 %v2897_v9, %v1836_v4  ;;  %v885_v0 = vpop.f32.mrf.mxu0 }
 0x25d   : > { %v1432_v5 = vmax.f32 %v1368_v1, 0.0  ;;  %v1708_v7 = vmax.f32 %v1595_v3, 0.0 }
 0x25e   : > { %v1984_v10 = vadd.f32 %v2366_v8, %v1837_v62 }
 0x25f   : > { %1644 = vmatmul.f32.gmra.mxu2 %v1432_v5 }
 0x260   : > { %2048 = vst.msk [vmem:[%s2909_s12 + $0xb0] sm:$0xff] %vm906_vm2, %v1984_v10  ;;  %1886 = vmatmul.f32.gmra.mxu3 %v1708_v7  ;;  %v1287_v11 = vpop.f32.mrf.mxu1 }
 0x261   : > { %v1288_v12 = vadd.f32 %v1287_v11, %v885_v0 }
 0x262   : > { %v1597_v13 = vpop.f32.mrf.mxu2 }
 0x263   : > { %v1369_v14 = vadd.f32 %v2939_v55, %v1288_v12  ;;  %v1598_v15 = vadd.f32 %v3078_v18, %v1597_v13  ;;  %v1839_v16 = vpop.f32.mrf.mxu3  ;;  %v2371_v13 = vld [vmem:[%s2523_s24 + $0xd8] sm:$0xff] }
 0x264   : > { %v1840_v17 = vadd.f32 %v2897_v9, %v1839_v16  ;;  %v888_v20 = vpop.f32.mrf.mxu0 }
 0x265   : > { %v1433_v21 = vmax.f32 %v1369_v14, 0.0  ;;  %v1709_v22 = vmax.f32 %v1598_v15, 0.0 }
 0x266   : > { %v1985_v24 = vadd.f32 %v2367_v23, %v1840_v17 }
 0x267   : > { %1647 = vmatmul.f32.gmra.mxu2 %v1433_v21 }
 0x268   : > { %2049 = vst.msk [vmem:[%s2909_s12 + $0xb8] sm:$0xff] %vm906_vm2, %v1985_v24  ;;  %1889 = vmatmul.f32.gmra.mxu3 %v1709_v22  ;;  %v1290_v25 = vpop.f32.mrf.mxu1 }
 0x269   : > { %v1291_v26 = vadd.f32 %v1290_v25, %v888_v20 }
 0x26a   : > { %v1600_v27 = vpop.f32.mrf.mxu2 }
 0x26b   : > { %v1370_v28 = vadd.f32 %v2939_v55, %v1291_v26  ;;  %v1601_v29 = vadd.f32 %v3078_v18, %v1600_v27  ;;  %v1842_v30 = vpop.f32.mrf.mxu3  ;;  %v2372_v27 = vld [vmem:[%s2523_s24 + $0xe0] sm:$0xff] }
 0x26c   : > { %v1843_v31 = vadd.f32 %v2897_v9, %v1842_v30  ;;  %v891_v32 = vpop.f32.mrf.mxu0 }
 0x26d   : > { %v1434_v34 = vmax.f32 %v1370_v28, 0.0  ;;  %v1710_v35 = vmax.f32 %v1601_v29, 0.0 }
 0x26e   : > { %v1986_v37 = vadd.f32 %v2368_v36, %v1843_v31 }
 0x26f   : > { %1650 = vmatmul.f32.gmra.mxu2 %v1434_v34 }
 0x270   : > { %2050 = vst.msk [vmem:[%s2909_s12 + $0xc0] sm:$0xff] %vm906_vm2, %v1986_v37  ;;  %1892 = vmatmul.f32.gmra.mxu3 %v1710_v35  ;;  %v1293_v38 = vpop.f32.mrf.mxu1 }
 0x271   : > { %v1294_v39 = vadd.f32 %v1293_v38, %v891_v32 }
 0x272   : > { %v1603_v40 = vpop.f32.mrf.mxu2 }
 0x273   : > { %v1371_v41 = vadd.f32 %v2939_v55, %v1294_v39  ;;  %v1604_v42 = vadd.f32 %v3078_v18, %v1603_v40  ;;  %v1845_v43 = vpop.f32.mrf.mxu3 }
 0x274   : > { %v1846_v44 = vadd.f32 %v2897_v9, %v1845_v43  ;;  %v894_v45 = vpop.f32.mrf.mxu0 }
 0x275   : > { %v1435_v46 = vmax.f32 %v1371_v41, 0.0  ;;  %v1711_v48 = vmax.f32 %v1604_v42, 0.0  ;;  %v2373_v41 = vld [vmem:[%s2523_s24 + $0xe8] sm:$0xff] }
 0x276   : > { %v1987_v50 = vadd.f32 %v2369_v49, %v1846_v44  ;;  %v2374_v49 = vld [vmem:[%s2523_s24 + $0xf0] sm:$0xff] }
 0x277   : > { %1653 = vmatmul.f32.gmra.mxu2 %v1435_v46 }
 0x278   : > { %2051 = vst.msk [vmem:[%s2909_s12 + $0xc8] sm:$0xff] %vm906_vm2, %v1987_v50  ;;  %1895 = vmatmul.f32.gmra.mxu3 %v1711_v48  ;;  %v1296_v51 = vpop.f32.mrf.mxu1 }
 0x279   : > { %v1297_v6 = vadd.f32 %v1296_v51, %v894_v45 }
 0x27a   : > { %v1606_v52 = vpop.f32.mrf.mxu2 }
 0x27b   : > { %v1372_v53 = vadd.f32 %v2939_v55, %v1297_v6  ;;  %v1607_v54 = vadd.f32 %v3078_v18, %v1606_v52  ;;  %v1848_v56 = vpop.f32.mrf.mxu3 }
 0x27c   : > { %v1849_v57 = vadd.f32 %v2897_v9, %v1848_v56  ;;  %v897_v58 = vpop.f32.mrf.mxu0  ;;  %v2375_v56 = vld [vmem:[%s2523_s24 + $0xf8] sm:$0xff] }
 0x27d   : > { %v1436_v59 = vmax.f32 %v1372_v53, 0.0  ;;  %v1712_v60 = vmax.f32 %v1607_v54, 0.0 }
 0x27e   : > { %v1988_v1 = vadd.f32 %v2370_v61, %v1849_v57 }
 0x27f   : > { %1656 = vmatmul.f32.gmra.mxu2 %v1436_v59 }
 0x280   : > { %2052 = vst.msk [vmem:[%s2909_s12 + $0xd0] sm:$0xff] %vm906_vm2, %v1988_v1  ;;  %1898 = vmatmul.f32.gmra.mxu3 %v1712_v60  ;;  %v1299_v3 = vpop.f32.mrf.mxu1 }
 0x281   : > { %v1300_v4 = vadd.f32 %v1299_v3, %v897_v58  ;;  %v2376_v3 = vld [vmem:[%s2523_s24 + $0x100] sm:$0xff] }
 0x282   : > { %v1609_v62 = vpop.f32.mrf.mxu2 }
 0x283   : > { %v1373_v0 = vadd.f32 %v2939_v55, %v1300_v4  ;;  %v1610_v5 = vadd.f32 %v3078_v18, %v1609_v62  ;;  %v1851_v7 = vpop.f32.mrf.mxu3 }
 0x284   : > { %v1852_v8 = vadd.f32 %v2897_v9, %v1851_v7  ;;  %v900_v10 = vpop.f32.mrf.mxu0 }
 0x285   : > { %v1437_v11 = vmax.f32 %v1373_v0, 0.0  ;;  %v1713_v12 = vmax.f32 %v1610_v5, 0.0 }
 0x286   : > { %v1989_v14 = vadd.f32 %v2371_v13, %v1852_v8 }
 0x287   : > { %1659 = vmatmul.f32.gmra.mxu2 %v1437_v11 }
 0x288   : > { %2053 = vst.msk [vmem:[%s2909_s12 + $0xd8] sm:$0xff] %vm906_vm2, %v1989_v14  ;;  %1901 = vmatmul.f32.gmra.mxu3 %v1713_v12  ;;  %v1302_v15 = vpop.f32.mrf.mxu1 }
 0x289   : > { %v1303_v16 = vadd.f32 %v1302_v15, %v900_v10  ;;  %v2377_v10 = vld [vmem:[%s2523_s24 + $0x108] sm:$0xff] }
 0x28a   : > { %v1612_v17 = vpop.f32.mrf.mxu2 }
 0x28b   : > { %v1374_v20 = vadd.f32 %v2939_v55, %v1303_v16  ;;  %v1613_v21 = vadd.f32 %v3078_v18, %v1612_v17  ;;  %v1854_v22 = vpop.f32.mrf.mxu3  ;;  %v2378_v17 = vld [vmem:[%s2523_s24 + $0x110] sm:$0xff] }
 0x28c   : > { %v1855_v23 = vadd.f32 %v2897_v9, %v1854_v22  ;;  %v903_v24 = vpop.f32.mrf.mxu0 }
 0x28d   : > { %v1438_v25 = vmax.f32 %v1374_v20, 0.0  ;;  %v1714_v26 = vmax.f32 %v1613_v21, 0.0 }
 0x28e   : > { %v1990_v28 = vadd.f32 %v2372_v27, %v1855_v23 }
 0x28f   : > { %1662 = vmatmul.f32.gmra.mxu2 %v1438_v25 }
 0x290   : > { %2054 = vst.msk [vmem:[%s2909_s12 + $0xe0] sm:$0xff] %vm906_vm2, %v1990_v28  ;;  %1904 = vmatmul.f32.gmra.mxu3 %v1714_v26  ;;  %v1305_v29 = vpop.f32.mrf.mxu1  ;;  %v2379_v26 = vld [vmem:[%s2523_s24 + $0x118] sm:$0xff] }
 0x291   : > { %v1306_v30 = vadd.f32 %v1305_v29, %v903_v24 }
 0x292   : > { %v1615_v31 = vpop.f32.mrf.mxu2 }
 0x293   : > { %v1375_v32 = vadd.f32 %v2939_v55, %v1306_v30  ;;  %v1616_v34 = vadd.f32 %v3078_v18, %v1615_v31  ;;  %v1857_v35 = vpop.f32.mrf.mxu3  ;;  %v3192_v31 = vld [vmem:[%s3331_s8] ss:$0 sm:$0xff] }
 0x294   : > { %v1858_v36 = vadd.f32 %v2897_v9, %v1857_v35  ;;  %v1477_v37 = vpop.f32.mrf.mxu0 }
 0x295   : > { %v1439_v38 = vmax.f32 %v1375_v32, 0.0  ;;  %v1715_v39 = vmax.f32 %v1616_v34, 0.0  ;;  %v1478_v40 = vadd.f32 %v3078_v18, %v1477_v37  ;;  %v2381_v34 = vld [vmem:[%s2523_s24 + $0x120] sm:$0xff] }
 0x296   : > { %v1991_v42 = vadd.f32 %v2373_v41, %v1858_v36  ;;  %v2382_v41 = vld [vmem:[%s2523_s24 + $0x128] sm:$0xff] }
 0x297   : > { %v1669_v43 = vmax.f32 %v1478_v40, 0.0  ;;  %1665 = vmatmul.f32.gmra.mxu2 %v1439_v38 }
 0x298   : > { %2055 = vst.msk [vmem:[%s2909_s12 + $0xe8] sm:$0xff] %vm906_vm2, %v1991_v42  ;;  %1907 = vmatmul.f32.gmra.mxu3 %v1715_v39 }
 0x299   : > { %1769 = vmatmul.f32.vlgmr.msrb.gmra.mxu1 %v1669_v43 }
 0x29a   : > { %v1618_v55 = vpop.f32.mrf.mxu2 }
 0x29b   : > { %v1619_v44 = vadd.f32 %v3078_v18, %v1618_v55  ;;  %v1860_v45 = vpop.f32.mrf.mxu3 }
 0x29c   : > { %v1861_v46 = vadd.f32 %v2897_v9, %v1860_v45 }
 0x29d   : > { %v1716_v48 = vmax.f32 %v1619_v44, 0.0 }
 0x29e   : > { %v1992_v50 = vadd.f32 %v2374_v49, %v1861_v46 }
 0x2a0   : > { %2056 = vst.msk [vmem:[%s2909_s12 + $0xf0] sm:$0xff] %vm906_vm2, %v1992_v50  ;;  %1910 = vmatmul.f32.gmra.mxu3 %v1716_v48  ;;  %v2383_v48 = vld [vmem:[%s2523_s24 + $0x130] sm:$0xff] }
 0x2a2   : > { %v1621_v51 = vpop.f32.mrf.mxu2 }
 0x2a3   : > { %v1622_v6 = vadd.f32 %v3078_v18, %v1621_v51  ;;  %v1863_v52 = vpop.f32.mrf.mxu3 }
 0x2a4   : > { %v1864_v53 = vadd.f32 %v2897_v9, %v1863_v52 }
 0x2a5   : > { %v1717_v54 = vmax.f32 %v1622_v6, 0.0 }
 0x2a6   : > { %v1993_v57 = vadd.f32 %v2375_v56, %v1864_v53 }
 0x2a8   : > { %2057 = vst.msk [vmem:[%s2909_s12 + $0xf8] sm:$0xff] %vm906_vm2, %v1993_v57  ;;  %1913 = vmatmul.f32.gmra.mxu3 %v1717_v54  ;;  %v2384_v54 = vld [vmem:[%s2523_s24 + $0x138] sm:$0xff] }
 0x2aa   : > { %v1624_v58 = vpop.f32.mrf.mxu2 }
 0x2ab   : > { %v1625_v59 = vadd.f32 %v3078_v18, %v1624_v58  ;;  %v1866_v60 = vpop.f32.mrf.mxu3 }
 0x2ac   : > { %v1867_v61 = vadd.f32 %v2897_v9, %v1866_v60 }
 0x2ad   : > { %v1718_v1 = vmax.f32 %v1625_v59, 0.0 }
 0x2ae   : > { %v1994_v4 = vadd.f32 %v2376_v3, %v1867_v61 }
 0x2b0   : > { %2058 = vst.msk [vmem:[%s2909_s12 + $0x100] sm:$0xff] %vm906_vm2, %v1994_v4  ;;  %1916 = vmatmul.f32.gmra.mxu3 %v1718_v1  ;;  %v2385_v1 = vld [vmem:[%s2523_s24 + $0x140] sm:$0xff] }
 0x2b2   : > { %v1627_v62 = vpop.f32.mrf.mxu2 }
 0x2b3   : > { %v1628_v0 = vadd.f32 %v3078_v18, %v1627_v62  ;;  %v1869_v5 = vpop.f32.mrf.mxu3 }
 0x2b4   : > { %v1870_v7 = vadd.f32 %v2897_v9, %v1869_v5 }
 0x2b5   : > { %v1719_v8 = vmax.f32 %v1628_v0, 0.0 }
 0x2b6   : > { %v1995_v11 = vadd.f32 %v2377_v10, %v1870_v7 }
 0x2b8   : > { %2059 = vst.msk [vmem:[%s2909_s12 + $0x108] sm:$0xff] %vm906_vm2, %v1995_v11  ;;  %1919 = vmatmul.f32.gmra.mxu3 %v1719_v8  ;;  %v2386_v8 = vld [vmem:[%s2523_s24 + $0x148] sm:$0xff] }
 0x2ba   : > { %v1630_v12 = vpop.f32.mrf.mxu2 }
 0x2bb   : > { %v1631_v13 = vadd.f32 %v3078_v18, %v1630_v12  ;;  %v1872_v14 = vpop.f32.mrf.mxu3 }
 0x2bc   : > { %v1873_v15 = vadd.f32 %v2897_v9, %v1872_v14 }
 0x2bd   : > { %v1720_v16 = vmax.f32 %v1631_v13, 0.0 }
 0x2be   : > { %v1996_v20 = vadd.f32 %v2378_v17, %v1873_v15 }
 0x2c0   : > { %2060 = vst.msk [vmem:[%s2909_s12 + $0x110] sm:$0xff] %vm906_vm2, %v1996_v20  ;;  %1922 = vmatmul.f32.gmra.mxu3 %v1720_v16  ;;  %v2387_v16 = vld [vmem:[%s2523_s24 + $0x150] sm:$0xff] }
 0x2c2   : > { %v1633_v21 = vpop.f32.mrf.mxu2 }
 0x2c3   : > { %v1634_v22 = vadd.f32 %v3078_v18, %v1633_v21  ;;  %v1875_v23 = vpop.f32.mrf.mxu3 }
 0x2c4   : > { %v1876_v24 = vadd.f32 %v2897_v9, %v1875_v23 }
 0x2c5   : > { %v1721_v25 = vmax.f32 %v1634_v22, 0.0 }
 0x2c6   : > { %v1997_v27 = vadd.f32 %v2379_v26, %v1876_v24 }
 0x2c8   : > { %2061 = vst.msk [vmem:[%s2909_s12 + $0x118] sm:$0xff] %vm906_vm2, %v1997_v27  ;;  %1925 = vmatmul.f32.gmra.mxu3 %v1721_v25  ;;  %v2388_v25 = vld [vmem:[%s2523_s24 + $0x158] sm:$0xff] }
 0x2ca   : > { %v1636_v28 = vpop.f32.mrf.mxu2 }
 0x2cb   : > { %v1637_v29 = vadd.f32 %v3078_v18, %v1636_v28  ;;  %v1878_v30 = vpop.f32.mrf.mxu3 }
 0x2cc   : > { %v1879_v32 = vadd.f32 %v3192_v31, %v1878_v30 }
 0x2cd   : > { %v1722_v9 = vmax.f32 %v1637_v29, 0.0 }
 0x2ce   : > { %v1998_v35 = vadd.f32 %v2381_v34, %v1879_v32 }
 0x2d0   : > { %2062 = vst.msk [vmem:[%s2909_s12 + $0x120] sm:$0xff] %vm906_vm2, %v1998_v35  ;;  %1928 = vmatmul.f32.gmra.mxu3 %v1722_v9  ;;  %v2389_v9 = vld [vmem:[%s2523_s24 + $0x160] sm:$0xff] }
 0x2d2   : > { %v1639_v36 = vpop.f32.mrf.mxu2 }
 0x2d3   : > { %v1640_v37 = vadd.f32 %v3078_v18, %v1639_v36  ;;  %v1881_v38 = vpop.f32.mrf.mxu3 }
 0x2d4   : > { %v1882_v39 = vadd.f32 %v3192_v31, %v1881_v38 }
 0x2d5   : > { %v1723_v40 = vmax.f32 %v1640_v37, 0.0 }
 0x2d6   : > { %v1999_v42 = vadd.f32 %v2382_v41, %v1882_v39 }
 0x2d8   : > { %2063 = vst.msk [vmem:[%s2909_s12 + $0x128] sm:$0xff] %vm906_vm2, %v1999_v42  ;;  %1931 = vmatmul.f32.gmra.mxu3 %v1723_v40  ;;  %v2390_v40 = vld [vmem:[%s2523_s24 + $0x168] sm:$0xff] }
 0x2da   : > { %v1642_v43 = vpop.f32.mrf.mxu2 }
 0x2db   : > { %v1643_v55 = vadd.f32 %v3078_v18, %v1642_v43  ;;  %v1884_v44 = vpop.f32.mrf.mxu3 }
 0x2dc   : > { %v1885_v45 = vadd.f32 %v3192_v31, %v1884_v44 }
 0x2dd   : > { %v1724_v46 = vmax.f32 %v1643_v55, 0.0  ;;  %v2391_v55 = vld [vmem:[%s2523_s24] sm:$0xff] }
 0x2de   : > { %v2000_v49 = vadd.f32 %v2383_v48, %v1885_v45 }
 0x2e0   : > { %2064 = vst.msk [vmem:[%s2909_s12 + $0x130] sm:$0xff] %vm906_vm2, %v2000_v49  ;;  %1934 = vmatmul.f32.gmra.mxu3 %v1724_v46 }
 0x2e2   : > { %v1645_v50 = vpop.f32.mrf.mxu2 }
 0x2e3   : > { %v1646_v51 = vadd.f32 %v3078_v18, %v1645_v50  ;;  %v1887_v6 = vpop.f32.mrf.mxu3 }
 0x2e4   : > { %v1888_v52 = vadd.f32 %v3192_v31, %v1887_v6 }
 0x2e5   : > { %v1725_v53 = vmax.f32 %v1646_v51, 0.0  ;;  %v2392_v51 = vld [vmem:[%s2523_s24 + $0x170] sm:$0xff] }
 0x2e6   : > { %v2001_v56 = vadd.f32 %v2384_v54, %v1888_v52  ;;  %v2393_v54 = vld [vmem:[%s2523_s24 + $0x178] sm:$0xff] }
 0x2e8   : > { %2065 = vst.msk [vmem:[%s2909_s12 + $0x138] sm:$0xff] %vm906_vm2, %v2001_v56  ;;  %1937 = vmatmul.f32.gmra.mxu3 %v1725_v53 }
 0x2ea   : > { %v1648_v57 = vpop.f32.mrf.mxu2 }
 0x2eb   : > { %v1649_v58 = vadd.f32 %v3078_v18, %v1648_v57  ;;  %v1890_v59 = vpop.f32.mrf.mxu3 }
 0x2ec   : > { %v1891_v60 = vadd.f32 %v3192_v31, %v1890_v59 }
 0x2ed   : > { %v1726_v61 = vmax.f32 %v1649_v58, 0.0  ;;  %v2394_v58 = vld [vmem:[%s2523_s24 + $0x180] sm:$0xff] }
 0x2ee   : > { %v2002_v3 = vadd.f32 %v2385_v1, %v1891_v60  ;;  %v2395_v1 = vld [vmem:[%s2523_s24 + $0x188] sm:$0xff] }
 0x2f0   : > { %2066 = vst.msk [vmem:[%s2909_s12 + $0x140] sm:$0xff] %vm906_vm2, %v2002_v3  ;;  %1940 = vmatmul.f32.gmra.mxu3 %v1726_v61 }
 0x2f2   : > { %v1651_v4 = vpop.f32.mrf.mxu2 }
 0x2f3   : > { %v1652_v62 = vadd.f32 %v3078_v18, %v1651_v4  ;;  %v1893_v0 = vpop.f32.mrf.mxu3 }
 0x2f4   : > { %v1894_v5 = vadd.f32 %v3192_v31, %v1893_v0  ;;  %v2396_v0 = vld [vmem:[%s2523_s24 + $0x190] sm:$0xff] }
 0x2f5   : > { %v1727_v7 = vmax.f32 %v1652_v62, 0.0 }
 0x2f6   : > { %v2003_v10 = vadd.f32 %v2386_v8, %v1894_v5 }
 0x2f8   : > { %2067 = vst.msk [vmem:[%s2909_s12 + $0x148] sm:$0xff] %vm906_vm2, %v2003_v10  ;;  %1943 = vmatmul.f32.gmra.mxu3 %v1727_v7  ;;  %v2397_v10 = vld [vmem:[%s2523_s24 + $0x198] sm:$0xff] }
 0x2fa   : > { %v1654_v11 = vpop.f32.mrf.mxu2 }
 0x2fb   : > { %v1655_v12 = vadd.f32 %v3078_v18, %v1654_v11  ;;  %v1896_v13 = vpop.f32.mrf.mxu3 }
 0x2fc   : > { %v1897_v14 = vadd.f32 %v3192_v31, %v1896_v13 }
 0x2fd   : > { %v1728_v15 = vmax.f32 %v1655_v12, 0.0 }
 0x2fe   : > { %v2004_v17 = vadd.f32 %v2387_v16, %v1897_v14  ;;  %v2398_v14 = vld [vmem:[%s2523_s24 + $0x1a0] sm:$0xff] }
 0x300   : > { %2068 = vst.msk [vmem:[%s2909_s12 + $0x150] sm:$0xff] %vm906_vm2, %v2004_v17  ;;  %1946 = vmatmul.f32.gmra.mxu3 %v1728_v15 }
 0x302   : > { %v1657_v20 = vpop.f32.mrf.mxu2 }
 0x303   : > { %v1658_v21 = vadd.f32 %v3078_v18, %v1657_v20  ;;  %v1899_v22 = vpop.f32.mrf.mxu3  ;;  %v2399_v20 = vld [vmem:[%s2523_s24 + $0x1a8] sm:$0xff] }
 0x304   : > { %v1900_v23 = vadd.f32 %v3192_v31, %v1899_v22 }
 0x305   : > { %v1729_v24 = vmax.f32 %v1658_v21, 0.0 }
 0x306   : > { %v2005_v26 = vadd.f32 %v2388_v25, %v1900_v23 }
 0x308   : > { %2069 = vst.msk [vmem:[%s2909_s12 + $0x158] sm:$0xff] %vm906_vm2, %v2005_v26  ;;  %1949 = vmatmul.f32.gmra.mxu3 %v1729_v24  ;;  %v2400_v24 = vld [vmem:[%s2523_s24 + $0x1b0] sm:$0xff] }
 0x30a   : > { %v1660_v27 = vpop.f32.mrf.mxu2 }
 0x30b   : > { %v1661_v28 = vadd.f32 %v3078_v18, %v1660_v27  ;;  %v1902_v29 = vpop.f32.mrf.mxu3 }
 0x30c   : > { %v1903_v30 = vadd.f32 %v3192_v31, %v1902_v29 }
 0x30d   : > { %v1730_v32 = vmax.f32 %v1661_v28, 0.0  ;;  %v2401_v28 = vld [vmem:[%s2523_s24 + $0x1b8] sm:$0xff] }
 0x30e   : > { %v2006_v34 = vadd.f32 %v2389_v9, %v1903_v30  ;;  %v2402_v9 = vld [vmem:[%s2523_s24 + $0x1c0] sm:$0xff] }
 0x310   : > { %2070 = vst.msk [vmem:[%s2909_s12 + $0x160] sm:$0xff] %vm906_vm2, %v2006_v34  ;;  %1952 = vmatmul.f32.gmra.mxu3 %v1730_v32 }
 0x312   : > { %v1663_v35 = vpop.f32.mrf.mxu2 }
 0x313   : > { %v1664_v36 = vadd.f32 %v3078_v18, %v1663_v35  ;;  %v1905_v37 = vpop.f32.mrf.mxu3 }
 0x314   : > { %v1906_v38 = vadd.f32 %v3192_v31, %v1905_v37  ;;  %v2403_v37 = vld [vmem:[%s2523_s24 + $0x1c8] sm:$0xff] }
 0x315   : > { %v1731_v39 = vmax.f32 %v1664_v36, 0.0 }
 0x316   : > { %v2007_v41 = vadd.f32 %v2390_v40, %v1906_v38  ;;  %v1770_v42 = vpop.f32.mrf.mxu1 }
 0x317   : > { %v1771_v43 = vadd.f32 %v3192_v31, %v1770_v42 }
 0x318   : > { %2071 = vst.msk [vmem:[%s2909_s12 + $0x168] sm:$0xff] %vm906_vm2, %v2007_v41  ;;  %1955 = vmatmul.f32.gmra.mxu3 %v1731_v39  ;;  %v2404_v41 = vld [vmem:[%s2523_s24 + $0x1d0] sm:$0xff] }
 0x319   : > { %v1962_v44 = vadd.f32 %v2391_v55, %v1771_v43 }
 0x31a   : > { %v1666_v45 = vpop.f32.mrf.mxu2 }
 0x31b   : > { %2026 = vst.msk [vmem:[%s2909_s12] sm:$0xff] %vm906_vm2, %v1962_v44  ;;  %v1667_v46 = vadd.f32 %v3078_v18, %v1666_v45  ;;  %v1908_v48 = vpop.f32.mrf.mxu3 }
 0x31c   : > { %v1909_v49 = vadd.f32 %v3192_v31, %v1908_v48 }
 0x31d   : > { %v1732_v50 = vmax.f32 %v1667_v46, 0.0 }
 0x31e   : > { %v2008_v6 = vadd.f32 %v2392_v51, %v1909_v49 }
 0x320   : > { %2072 = vst.msk [vmem:[%s2909_s12 + $0x170] sm:$0xff] %vm906_vm2, %v2008_v6  ;;  %1958 = vmatmul.f32.gmra.mxu3 %v1732_v50 }
 0x323   : > { %v1911_v52 = vpop.f32.mrf.mxu3 }
 0x324   : > { %v1912_v53 = vadd.f32 %v3192_v31, %v1911_v52 }
 0x326   : > { %v2009_v56 = vadd.f32 %v2393_v54, %v1912_v53 }
 0x328   : > { %2073 = vst.msk [vmem:[%s2909_s12 + $0x178] sm:$0xff] %vm906_vm2, %v2009_v56 }
 0x32b   : > { %v1914_v18 = vpop.f32.mrf.mxu3 }
 0x32c   : > { %v1915_v57 = vadd.f32 %v3192_v31, %v1914_v18 }
 0x32e   : > { %v2010_v59 = vadd.f32 %v2394_v58, %v1915_v57 }
 0x330   : > { %2074 = vst.msk [vmem:[%s2909_s12 + $0x180] sm:$0xff] %vm906_vm2, %v2010_v59 }
 0x333   : > { %v1917_v60 = vpop.f32.mrf.mxu3 }
 0x334   : > { %v1918_v61 = vadd.f32 %v3192_v31, %v1917_v60 }
 0x336   : > { %v2011_v3 = vadd.f32 %v2395_v1, %v1918_v61 }
 0x338   : > { %2075 = vst.msk [vmem:[%s2909_s12 + $0x188] sm:$0xff] %vm906_vm2, %v2011_v3 }
 0x33b   : > { %v1920_v4 = vpop.f32.mrf.mxu3 }
 0x33c   : > { %v1921_v62 = vadd.f32 %v3192_v31, %v1920_v4 }
 0x33e   : > { %v2012_v5 = vadd.f32 %v2396_v0, %v1921_v62 }
 0x340   : > { %2076 = vst.msk [vmem:[%s2909_s12 + $0x190] sm:$0xff] %vm906_vm2, %v2012_v5 }
 0x343   : > { %v1923_v7 = vpop.f32.mrf.mxu3 }
 0x344   : > { %v1924_v8 = vadd.f32 %v3192_v31, %v1923_v7 }
 0x346   : > { %v2013_v11 = vadd.f32 %v2397_v10, %v1924_v8 }
 0x348   : > { %2077 = vst.msk [vmem:[%s2909_s12 + $0x198] sm:$0xff] %vm906_vm2, %v2013_v11 }
 0x34b   : > { %v1926_v12 = vpop.f32.mrf.mxu3 }
 0x34c   : > { %v1927_v13 = vadd.f32 %v3192_v31, %v1926_v12 }
 0x34e   : > { %v2014_v15 = vadd.f32 %v2398_v14, %v1927_v13 }
 0x350   : > { %2078 = vst.msk [vmem:[%s2909_s12 + $0x1a0] sm:$0xff] %vm906_vm2, %v2014_v15 }
 0x353   : > { %v1929_v16 = vpop.f32.mrf.mxu3 }
 0x354   : > { %v1930_v17 = vadd.f32 %v3192_v31, %v1929_v16 }
 0x356   : > { %v2015_v21 = vadd.f32 %v2399_v20, %v1930_v17 }
 0x358   : > { %2079 = vst.msk [vmem:[%s2909_s12 + $0x1a8] sm:$0xff] %vm906_vm2, %v2015_v21 }
 0x35b   : > { %v1932_v22 = vpop.f32.mrf.mxu3 }
 0x35c   : > { %v1933_v23 = vadd.f32 %v3192_v31, %v1932_v22 }
 0x35e   : > { %v2016_v25 = vadd.f32 %v2400_v24, %v1933_v23 }
 0x360   : > { %2080 = vst.msk [vmem:[%s2909_s12 + $0x1b0] sm:$0xff] %vm906_vm2, %v2016_v25 }
 0x363   : > { %v1935_v26 = vpop.f32.mrf.mxu3 }
 0x364   : > { %v1936_v27 = vadd.f32 %v3192_v31, %v1935_v26 }
 0x366   : > { %v2017_v29 = vadd.f32 %v2401_v28, %v1936_v27 }
 0x368   : > { %2081 = vst.msk [vmem:[%s2909_s12 + $0x1b8] sm:$0xff] %vm906_vm2, %v2017_v29 }
 0x36b   : > { %v1938_v30 = vpop.f32.mrf.mxu3 }
 0x36c   : > { %v1939_v32 = vadd.f32 %v3192_v31, %v1938_v30 }
 0x36e   : > { %v2018_v34 = vadd.f32 %v2402_v9, %v1939_v32 }
 0x370   : > { %2082 = vst.msk [vmem:[%s2909_s12 + $0x1c0] sm:$0xff] %vm906_vm2, %v2018_v34 }
 0x373   : > { %v1941_v35 = vpop.f32.mrf.mxu3 }
 0x374   : > { %v1942_v36 = vadd.f32 %v3192_v31, %v1941_v35 }
 0x376   : > { %v2019_v38 = vadd.f32 %v2403_v37, %v1942_v36 }
 0x378   : > { %2083 = vst.msk [vmem:[%s2909_s12 + $0x1c8] sm:$0xff] %vm906_vm2, %v2019_v38 }
 0x37b   : > { %v1944_v39 = vpop.f32.mrf.mxu3 }
 0x37c   : > { %v1945_v40 = vadd.f32 %v3192_v31, %v1944_v39 }
 0x37e   : > { %v2020_v42 = vadd.f32 %v2404_v41, %v1945_v40 }
 0x380   : > { %2084 = vst.msk [vmem:[%s2909_s12 + $0x1d0] sm:$0xff] %vm906_vm2, %v2020_v42 }
 0x383   : > { %v1947_v43 = vpop.f32.mrf.mxu3 }
 0x384   : > { %v1948_v55 = vadd.f32 %v3192_v31, %v1947_v43 }
 0x386   : > { %v2021_v44 = vadd.f32 %v1948_v55, %v2991_v2 }
 0x388   : > { %2085 = vst.msk [vmem:[%s2909_s12 + $0x1d8] sm:$0xff] %vm906_vm2, %v2021_v44 }
 0x38b   : > { %v1950_v45 = vpop.f32.mrf.mxu3 }
 0x38c   : > { %v1951_v46 = vadd.f32 %v3192_v31, %v1950_v45 }
 0x38e   : > { %v2022_v48 = vadd.f32 %v1951_v46, %v3004_v19 }
 0x390   : > { %2086 = vst.msk [vmem:[%s2909_s12 + $0x1e0] sm:$0xff] %vm906_vm2, %v2022_v48 }
 0x393   : > { %v1953_v49 = vpop.f32.mrf.mxu3 }
 0x394   : > { %v1954_v50 = vadd.f32 %v3192_v31, %v1953_v49 }
 0x396   : > { %v2023_v51 = vadd.f32 %v1954_v50, %v3017_v33 }
 0x398   : > { %2087 = vst.msk [vmem:[%s2909_s12 + $0x1e8] sm:$0xff] %vm906_vm2, %v2023_v51 }
 0x39b   : > { %v1956_v6 = vpop.f32.mrf.mxu3 }
 0x39c   : > { %v1957_v2 = vadd.f32 %v3192_v31, %v1956_v6 }
 0x39e   : > { %v2024_v52 = vadd.f32 %v1957_v2, %v3030_v47 }
 0x3a0   : > { %2088 = vst.msk [vmem:[%s2909_s12 + $0x1f0] sm:$0xff] %vm906_vm2, %v2024_v52 }
 0x3a3   : > { %v1959_v53 = vpop.f32.mrf.mxu3 }
 0x3a4   : > { %v1960_v54 = vadd.f32 %v3192_v31, %v1959_v53 }
 0x3a6   : > { %v2025_v19 = vadd.f32 %v1960_v54, %v3045_v63 }
 0x3a8   : > { %2089 = vst.msk [vmem:[%s2909_s12 + $0x1f8] sm:$0xff] %vm906_vm2, %v2025_v19 }
 0x3a9 PF: > { %s19_s30 = sadd.s32 1, %s2411_s30  }
 0x3aa   : > { %p16_p4 = scmp.ge.s32.totalorder %s19_s30, 6  }
 0x3ac   :  { %18 = sbr.rel (!%p16_p4) target bundleno = 1 (0x1), region = 89 }

</bundles_post_ra>
